<compile_context>
chip_gen: v6e
topology: v6e:2x2x1
jax: 0.10.0
libtpu: 0.0.40
codegen_flags: <defaults>
</compile_context>

<pallas_src>
import functools

import jax
import jax.numpy as jnp
from jax.experimental import pallas as pl
from jax.experimental.pallas import tpu as pltpu


# Architecture implied by the PyTorch module: layers = (2, 32, 32, 32, 32, 32, 1)
LAYERS = (2, 32, 32, 32, 32, 32, 1)


def _default_elementwise_dtype():
    """bf16 elementwise on bf16-capable VPU/EUP (v6e/v7x); f32 elsewhere (v5e)."""
    try:
        kind = jax.devices()[0].device_kind.lower()
    except Exception:  # pragma: no cover - defensive
        return jnp.float32
    if ("v6" in kind) or ("v7" in kind) or ("7x" in kind):
        return jnp.bfloat16
    return jnp.float32


def _mlp_kernel(x_ref, w_ref, b_ref, o_ref, *, approx_tanh):
    """One batch tile.

    x_ref: (din_pad, tm) f32     -- input features on sublanes, batch on lanes
    w_ref: (L, H, H)  mxu dtype  -- zero-padded PyTorch (out, in) weights
    b_ref: (L, H, 1)  ew dtype   -- zero-padded biases (column for lane bcast)
    o_ref: (dout, tm) f32        -- lane-dense output row(s)
    """
    n_layers = w_ref.shape[0]
    cdt = w_ref.dtype            # MXU operand dtype (bf16)
    ew = b_ref.dtype             # elementwise dtype (bf16 on v6e/v7x, f32 on v5e)

    use_eup_formula = approx_tanh and ew == jnp.float32

    def act(z):
        if use_eup_formula:
            # tanh(z) = 1 - 2/(exp(2z)+1): exp and vrcp both issue on the EUP
            # slot, so the activation never becomes a VALU polynomial (f32 path,
            # i.e. v5e, where the VALU is the binding slot).
            e = jnp.exp(2.0 * z)
            return 1.0 - 2.0 * pl.reciprocal(e + 1.0, approx=True)
        # bf16 path (v6e/v7x): packed bf16 EUP tanh.
        # TODO(synk): if the bundle dump shows this lowering as a VPU
        # polynomial, switch it to the exp/reciprocal EUP formula in bf16 too.
        return jnp.tanh(z)

    x = x_ref[...].astype(cdt)           # (din_pad, tm); padded rows are 0
    din_pad = x.shape[0]

    # Layer 0: contract over the (sublane-padded) input features only.  Padded
    # weight columns / padded input rows are zero, so the math is exact.
    w0 = w_ref[0][:, :din_pad]           # (H, din_pad)
    z = jnp.dot(w0, x, preferred_element_type=jnp.float32)
    z = z.astype(ew) + b_ref[0]          # bias add in the elementwise dtype
    a = act(z)

    # Hidden layers 1..L-2 (tanh) and the final linear layer L-1 (no tanh).
    # Activations stay in `ew` (== MXU dtype on the bf16 path -> no casts).
    for i in range(1, n_layers):
        z = jnp.dot(w_ref[i], a.astype(cdt), preferred_element_type=jnp.float32)
        z = z.astype(ew) + b_ref[i]
        a = act(z) if i + 1 < n_layers else z

    # Only the first `dout` rows are real (the rest come from zero-padded
    # weight rows).  Store the lane-dense output block.
    o_ref[...] = a[: o_ref.shape[0], :].astype(o_ref.dtype)


def _pack_params(weights, biases, mxu_dtype, ew_dtype):
    """Pack all layers into two small VMEM-resident arrays (done ONCE)."""
    n_layers = len(weights)
    h = max(max(w.shape) for w in weights)           # hidden width (32)
    Wp = jnp.zeros((n_layers, h, h), jnp.float32)
    Bp = jnp.zeros((n_layers, h, 1), jnp.float32)
    for i, (w, b) in enumerate(zip(weights, biases)):
        Wp = Wp.at[i, : w.shape[0], : w.shape[1]].set(w.astype(jnp.float32))
        Bp = Bp.at[i, : b.shape[0], 0].set(b.astype(jnp.float32))
    return Wp.astype(mxu_dtype), Bp.astype(ew_dtype)


def _pick_tm(n):
    """Adaptive lane tile: big enough to amortize per-step overhead, small
    enough that the grid stays >= 2 (v7x has 2 TensorCores)."""
    tm = -(-(-(-n // 2)) // 128) * 128               # round_up(ceil(n/2), 128)
    return max(128, min(2048, tm))


def _mlp_forward_impl(x, Wp, Bp, *, dout, approx_tanh, tm):
    N, din = x.shape
    n_layers, h, _ = Wp.shape
    din_pad = -(-din // 8) * 8                       # round up to sublane tile
    if tm is None:
        tm = _pick_tm(N)
    n_pad = -(-N // tm) * tm

    # Batch-on-lanes layout: x^T zero-padded to (din_pad, n_pad).
    x_t = jnp.zeros((din_pad, n_pad), jnp.float32).at[:din, :N].set(x.T)

    kernel = functools.partial(_mlp_kernel, approx_tanh=approx_tanh)
    out = pl.pallas_call(
        kernel,
        out_shape=jax.ShapeDtypeStruct((dout, n_pad), jnp.float32),
        grid_spec=pltpu.PrefetchScalarGridSpec(
            num_scalar_prefetch=0,
            grid=(n_pad // tm,),
            in_specs=[
                pl.BlockSpec((din_pad, tm), lambda i: (0, i)),
                # Constant index_map: weights/biases DMA'd once, VMEM-resident.
                pl.BlockSpec((n_layers, h, h), lambda i: (0, 0, 0)),
                pl.BlockSpec((n_layers, h, 1), lambda i: (0, 0, 0)),
            ],
            out_specs=pl.BlockSpec((dout, tm), lambda i: (0, i)),
        ),
        compiler_params=pltpu.CompilerParams(
            dimension_semantics=("parallel",)),
    )(x_t, Wp, Bp)

    return out[:, :N].T                              # (N, dout)


def make_mlp_forward(weights, biases, *, tm=None, mxu_dtype=jnp.bfloat16,
                     elementwise_dtype=None, approx_tanh=True):
    """Build a jitted fused-MLP forward matching the PyTorch module.

    weights[i]: (out_i, in_i) float32 (PyTorch nn.Linear layout, NOT transposed)
    biases[i]:  (out_i,) float32
    tm:         lane tile (multiple of 128) or None for the adaptive default.
    mxu_dtype:  matmul operand dtype (bf16 is MXU-native, f32 accumulation).
    elementwise_dtype: dtype for bias add / tanh / inter-layer activations;
                None -> bf16 on v6e/v7x, f32 on v5e/unknown.
    approx_tanh: on the f32 elementwise path, use the EUP exp/vrcp tanh formula.
    """
    if elementwise_dtype is None:
        elementwise_dtype = _default_elementwise_dtype()
    if tm is not None:
        assert tm % 128 == 0, "tm must be a multiple of 128 (lane width)"
    dout = weights[-1].shape[0]

    # Hoisted out of the per-call hot path: pack once, reuse every call.
    Wp, Bp = _pack_params(weights, biases, mxu_dtype, elementwise_dtype)

    @jax.jit
    def forward(x):
        return _mlp_forward_impl(x, Wp, Bp, dout=dout,
                                 approx_tanh=approx_tanh, tm=tm)

    return forward


def _init_params(key, layers):
    """Deterministic synthetic parameters in PyTorch layout: W (out, in), b (out,)."""
    weights, biases = [], []
    for i in range(len(layers) - 1):
        key, kw, kb = jax.random.split(key, 3)
        fan_in, fan_out = layers[i], layers[i + 1]
        w = jax.random.normal(kw, (fan_out, fan_in), jnp.float32) / jnp.sqrt(fan_in)
        b = jax.random.normal(kb, (fan_out,), jnp.float32) * 0.1
        weights.append(w)
        biases.append(b)
    return weights, biases


def _reference(x, weights, biases, operand_dtype=jnp.float32,
               elementwise_dtype=jnp.float32):
    """Pure-JAX reference mirroring the kernel's dtype handling."""
    a = x
    n = len(weights)
    for i, (w, b) in enumerate(zip(weights, biases)):
        z = jnp.dot(a.astype(operand_dtype), w.T.astype(operand_dtype),
                    preferred_element_type=jnp.float32)
        z = z.astype(elementwise_dtype) + b.astype(elementwise_dtype)
        a = jnp.tanh(z) if i + 1 < n else z
    return a.astype(jnp.float32)


if __name__ == "__main__":
    key = jax.random.PRNGKey(0)
    key, kx = jax.random.split(key)

    N = 1000  # collocation points (x, t); deliberately not a multiple of tm
    x = jax.random.normal(kx, (N, LAYERS[0]), jnp.float32)
    weights, biases = _init_params(key, LAYERS)

    ew = _default_elementwise_dtype()
    fwd = make_mlp_forward(weights, biases, mxu_dtype=jnp.bfloat16,
                           elementwise_dtype=ew, approx_tanh=True)

    out = jax.block_until_ready(fwd(x))
    assert out.shape == (N, 1)

    # Check vs a reference that mirrors the kernel's operand/elementwise dtypes
    # (bf16 matmul operands; bf16 or f32 elementwise depending on chip).
    ref_mirror = _reference(x, weights, biases,
                            operand_dtype=jnp.bfloat16, elementwise_dtype=ew)
    assert jnp.allclose(out, ref_mirror, atol=2e-2, rtol=2e-2), \
        "mismatch vs dtype-mirrored reference"

    # Loose sanity check vs the full-f32 reference (catches gross errors).
    ref_f32 = _reference(x, weights, biases)
    assert jnp.allclose(out, ref_f32, atol=5e-2, rtol=5e-2), \
        "mismatch vs f32 reference"

    print("KERNEL_OK")
</pallas_src>

<mosaic_0001>
module attributes {stable_mosaic.version = 11 : i64} {
  func.func @_mlp_kernel(%arg0: i32, %arg1: memref<8x512xf32, #tpu.memory_space<vmem>>, %arg2: memref<6x32x32xbf16, #tpu.memory_space<vmem>>, %arg3: memref<6x32x1xf32, #tpu.memory_space<vmem>>, %arg4: memref<1x512xf32, #tpu.memory_space<vmem>>) attributes {dimension_semantics = [#tpu.dimension_semantics<parallel>], iteration_bounds = array<i64: 2>, scalar_prefetch = 0 : i64, scratch_operands = 0 : i64, tpu.core_type = #tpu.core_type<tc>, window_params = [{transform_indices = @transform_0, window_bounds = array<i64: 8, 512>}, {pipeline_mode = #tpu.pipeline_mode<synchronous>, transform_indices = @transform_1, window_bounds = array<i64: 6, 32, 32>}, {pipeline_mode = #tpu.pipeline_mode<synchronous>, transform_indices = @transform_2, window_bounds = array<i64: 6, 32, 1>}, {transform_indices = @transform_3, window_bounds = array<i64: 1, 512>}]} {
    %c0 = arith.constant 0 : index
    %c0_0 = arith.constant 0 : index
    %0 = vector.load %arg1[%c0, %c0_0] : memref<8x512xf32, #tpu.memory_space<vmem>>, vector<8x512xf32>
    %1 = arith.truncf %0 : vector<8x512xf32> to vector<8x512xbf16>
    %c0_1 = arith.constant 0 : index
    %c0_2 = arith.constant 0 : index
    %c0_3 = arith.constant 0 : index
    %2 = vector.load %arg2[%c0_1, %c0_2, %c0_3] : memref<6x32x32xbf16, #tpu.memory_space<vmem>>, vector<1x32x32xbf16>
    %3 = vector.shape_cast %2 : vector<1x32x32xbf16> to vector<32x32xbf16>
    %4 = vector.extract_strided_slice %3 {offsets = [0, 0], sizes = [32, 8], strides = [1, 1]} : vector<32x32xbf16> to vector<32x8xbf16>
    %cst = arith.constant dense<0.000000e+00> : vector<32x512xf32>
    %5 = tpu.matmul %4, %1, %cst {dimension_numbers = #tpu.dot_dimension_numbers<[1], [0], [0], [1], [0, 0, 1, 1], [], []>} : vector<32x8xbf16>, vector<8x512xbf16>, vector<32x512xf32> -> vector<32x512xf32>
    %c0_4 = arith.constant 0 : index
    %c0_5 = arith.constant 0 : index
    %c0_6 = arith.constant 0 : index
    %6 = vector.load %arg3[%c0_4, %c0_5, %c0_6] : memref<6x32x1xf32, #tpu.memory_space<vmem>>, vector<1x32x1xf32>
    %7 = vector.shape_cast %6 : vector<1x32x1xf32> to vector<32x1xf32>
    %8 = vector.broadcast %7 : vector<32x1xf32> to vector<32x512xf32>
    %9 = arith.addf %5, %8 : vector<32x512xf32>
    %cst_7 = arith.constant 2.000000e+00 : f32
    %10 = vector.broadcast %cst_7 : f32 to vector<32x512xf32>
    %11 = arith.mulf %10, %9 : vector<32x512xf32>
    %12 = math.exp %11 : vector<32x512xf32>
    %cst_8 = arith.constant 1.000000e+00 : f32
    %13 = vector.broadcast %cst_8 : f32 to vector<32x512xf32>
    %14 = arith.addf %12, %13 : vector<32x512xf32>
    %15 = tpu.reciprocal %14 {approx = true} : vector<32x512xf32> -> vector<32x512xf32>
    %cst_9 = arith.constant 2.000000e+00 : f32
    %16 = vector.broadcast %cst_9 : f32 to vector<32x512xf32>
    %17 = arith.mulf %16, %15 : vector<32x512xf32>
    %cst_10 = arith.constant 1.000000e+00 : f32
    %18 = vector.broadcast %cst_10 : f32 to vector<32x512xf32>
    %19 = arith.subf %18, %17 : vector<32x512xf32>
    %c1 = arith.constant 1 : index
    %c0_11 = arith.constant 0 : index
    %c0_12 = arith.constant 0 : index
    %20 = vector.load %arg2[%c1, %c0_11, %c0_12] : memref<6x32x32xbf16, #tpu.memory_space<vmem>>, vector<1x32x32xbf16>
    %21 = vector.shape_cast %20 : vector<1x32x32xbf16> to vector<32x32xbf16>
    %22 = arith.truncf %19 : vector<32x512xf32> to vector<32x512xbf16>
    %cst_13 = arith.constant dense<0.000000e+00> : vector<32x512xf32>
    %23 = tpu.matmul %21, %22, %cst_13 {dimension_numbers = #tpu.dot_dimension_numbers<[1], [0], [0], [1], [0, 0, 1, 1], [], []>} : vector<32x32xbf16>, vector<32x512xbf16>, vector<32x512xf32> -> vector<32x512xf32>
    %c1_14 = arith.constant 1 : index
    %c0_15 = arith.constant 0 : index
    %c0_16 = arith.constant 0 : index
    %24 = vector.load %arg3[%c1_14, %c0_15, %c0_16] : memref<6x32x1xf32, #tpu.memory_space<vmem>>, vector<1x32x1xf32>
    %25 = vector.shape_cast %24 : vector<1x32x1xf32> to vector<32x1xf32>
    %26 = vector.broadcast %25 : vector<32x1xf32> to vector<32x512xf32>
    %27 = arith.addf %23, %26 : vector<32x512xf32>
    %cst_17 = arith.constant 2.000000e+00 : f32
    %28 = vector.broadcast %cst_17 : f32 to vector<32x512xf32>
    %29 = arith.mulf %28, %27 : vector<32x512xf32>
    %30 = math.exp %29 : vector<32x512xf32>
    %cst_18 = arith.constant 1.000000e+00 : f32
    %31 = vector.broadcast %cst_18 : f32 to vector<32x512xf32>
    %32 = arith.addf %30, %31 : vector<32x512xf32>
    %33 = tpu.reciprocal %32 {approx = true} : vector<32x512xf32> -> vector<32x512xf32>
    %cst_19 = arith.constant 2.000000e+00 : f32
    %34 = vector.broadcast %cst_19 : f32 to vector<32x512xf32>
    %35 = arith.mulf %34, %33 : vector<32x512xf32>
    %cst_20 = arith.constant 1.000000e+00 : f32
    %36 = vector.broadcast %cst_20 : f32 to vector<32x512xf32>
    %37 = arith.subf %36, %35 : vector<32x512xf32>
    %c2 = arith.constant 2 : index
    %c0_21 = arith.constant 0 : index
    %c0_22 = arith.constant 0 : index
    %38 = vector.load %arg2[%c2, %c0_21, %c0_22] : memref<6x32x32xbf16, #tpu.memory_space<vmem>>, vector<1x32x32xbf16>
    %39 = vector.shape_cast %38 : vector<1x32x32xbf16> to vector<32x32xbf16>
    %40 = arith.truncf %37 : vector<32x512xf32> to vector<32x512xbf16>
    %cst_23 = arith.constant dense<0.000000e+00> : vector<32x512xf32>
    %41 = tpu.matmul %39, %40, %cst_23 {dimension_numbers = #tpu.dot_dimension_numbers<[1], [0], [0], [1], [0, 0, 1, 1], [], []>} : vector<32x32xbf16>, vector<32x512xbf16>, vector<32x512xf32> -> vector<32x512xf32>
    %c2_24 = arith.constant 2 : index
    %c0_25 = arith.constant 0 : index
    %c0_26 = arith.constant 0 : index
    %42 = vector.load %arg3[%c2_24, %c0_25, %c0_26] : memref<6x32x1xf32, #tpu.memory_space<vmem>>, vector<1x32x1xf32>
    %43 = vector.shape_cast %42 : vector<1x32x1xf32> to vector<32x1xf32>
    %44 = vector.broadcast %43 : vector<32x1xf32> to vector<32x512xf32>
    %45 = arith.addf %41, %44 : vector<32x512xf32>
    %cst_27 = arith.constant 2.000000e+00 : f32
    %46 = vector.broadcast %cst_27 : f32 to vector<32x512xf32>
    %47 = arith.mulf %46, %45 : vector<32x512xf32>
    %48 = math.exp %47 : vector<32x512xf32>
    %cst_28 = arith.constant 1.000000e+00 : f32
    %49 = vector.broadcast %cst_28 : f32 to vector<32x512xf32>
    %50 = arith.addf %48, %49 : vector<32x512xf32>
    %51 = tpu.reciprocal %50 {approx = true} : vector<32x512xf32> -> vector<32x512xf32>
    %cst_29 = arith.constant 2.000000e+00 : f32
    %52 = vector.broadcast %cst_29 : f32 to vector<32x512xf32>
    %53 = arith.mulf %52, %51 : vector<32x512xf32>
    %cst_30 = arith.constant 1.000000e+00 : f32
    %54 = vector.broadcast %cst_30 : f32 to vector<32x512xf32>
    %55 = arith.subf %54, %53 : vector<32x512xf32>
    %c3 = arith.constant 3 : index
    %c0_31 = arith.constant 0 : index
    %c0_32 = arith.constant 0 : index
    %56 = vector.load %arg2[%c3, %c0_31, %c0_32] : memref<6x32x32xbf16, #tpu.memory_space<vmem>>, vector<1x32x32xbf16>
    %57 = vector.shape_cast %56 : vector<1x32x32xbf16> to vector<32x32xbf16>
    %58 = arith.truncf %55 : vector<32x512xf32> to vector<32x512xbf16>
    %cst_33 = arith.constant dense<0.000000e+00> : vector<32x512xf32>
    %59 = tpu.matmul %57, %58, %cst_33 {dimension_numbers = #tpu.dot_dimension_numbers<[1], [0], [0], [1], [0, 0, 1, 1], [], []>} : vector<32x32xbf16>, vector<32x512xbf16>, vector<32x512xf32> -> vector<32x512xf32>
    %c3_34 = arith.constant 3 : index
    %c0_35 = arith.constant 0 : index
    %c0_36 = arith.constant 0 : index
    %60 = vector.load %arg3[%c3_34, %c0_35, %c0_36] : memref<6x32x1xf32, #tpu.memory_space<vmem>>, vector<1x32x1xf32>
    %61 = vector.shape_cast %60 : vector<1x32x1xf32> to vector<32x1xf32>
    %62 = vector.broadcast %61 : vector<32x1xf32> to vector<32x512xf32>
    %63 = arith.addf %59, %62 : vector<32x512xf32>
    %cst_37 = arith.constant 2.000000e+00 : f32
    %64 = vector.broadcast %cst_37 : f32 to vector<32x512xf32>
    %65 = arith.mulf %64, %63 : vector<32x512xf32>
    %66 = math.exp %65 : vector<32x512xf32>
    %cst_38 = arith.constant 1.000000e+00 : f32
    %67 = vector.broadcast %cst_38 : f32 to vector<32x512xf32>
    %68 = arith.addf %66, %67 : vector<32x512xf32>
    %69 = tpu.reciprocal %68 {approx = true} : vector<32x512xf32> -> vector<32x512xf32>
    %cst_39 = arith.constant 2.000000e+00 : f32
    %70 = vector.broadcast %cst_39 : f32 to vector<32x512xf32>
    %71 = arith.mulf %70, %69 : vector<32x512xf32>
    %cst_40 = arith.constant 1.000000e+00 : f32
    %72 = vector.broadcast %cst_40 : f32 to vector<32x512xf32>
    %73 = arith.subf %72, %71 : vector<32x512xf32>
    %c4 = arith.constant 4 : index
    %c0_41 = arith.constant 0 : index
    %c0_42 = arith.constant 0 : index
    %74 = vector.load %arg2[%c4, %c0_41, %c0_42] : memref<6x32x32xbf16, #tpu.memory_space<vmem>>, vector<1x32x32xbf16>
    %75 = vector.shape_cast %74 : vector<1x32x32xbf16> to vector<32x32xbf16>
    %76 = arith.truncf %73 : vector<32x512xf32> to vector<32x512xbf16>
    %cst_43 = arith.constant dense<0.000000e+00> : vector<32x512xf32>
    %77 = tpu.matmul %75, %76, %cst_43 {dimension_numbers = #tpu.dot_dimension_numbers<[1], [0], [0], [1], [0, 0, 1, 1], [], []>} : vector<32x32xbf16>, vector<32x512xbf16>, vector<32x512xf32> -> vector<32x512xf32>
    %c4_44 = arith.constant 4 : index
    %c0_45 = arith.constant 0 : index
    %c0_46 = arith.constant 0 : index
    %78 = vector.load %arg3[%c4_44, %c0_45, %c0_46] : memref<6x32x1xf32, #tpu.memory_space<vmem>>, vector<1x32x1xf32>
    %79 = vector.shape_cast %78 : vector<1x32x1xf32> to vector<32x1xf32>
    %80 = vector.broadcast %79 : vector<32x1xf32> to vector<32x512xf32>
    %81 = arith.addf %77, %80 : vector<32x512xf32>
    %cst_47 = arith.constant 2.000000e+00 : f32
    %82 = vector.broadcast %cst_47 : f32 to vector<32x512xf32>
    %83 = arith.mulf %82, %81 : vector<32x512xf32>
    %84 = math.exp %83 : vector<32x512xf32>
    %cst_48 = arith.constant 1.000000e+00 : f32
    %85 = vector.broadcast %cst_48 : f32 to vector<32x512xf32>
    %86 = arith.addf %84, %85 : vector<32x512xf32>
    %87 = tpu.reciprocal %86 {approx = true} : vector<32x512xf32> -> vector<32x512xf32>
    %cst_49 = arith.constant 2.000000e+00 : f32
    %88 = vector.broadcast %cst_49 : f32 to vector<32x512xf32>
    %89 = arith.mulf %88, %87 : vector<32x512xf32>
    %cst_50 = arith.constant 1.000000e+00 : f32
    %90 = vector.broadcast %cst_50 : f32 to vector<32x512xf32>
    %91 = arith.subf %90, %89 : vector<32x512xf32>
    %c5 = arith.constant 5 : index
    %c0_51 = arith.constant 0 : index
    %c0_52 = arith.constant 0 : index
    %92 = vector.load %arg2[%c5, %c0_51, %c0_52] : memref<6x32x32xbf16, #tpu.memory_space<vmem>>, vector<1x32x32xbf16>
    %93 = vector.shape_cast %92 : vector<1x32x32xbf16> to vector<32x32xbf16>
    %94 = arith.truncf %91 : vector<32x512xf32> to vector<32x512xbf16>
    %cst_53 = arith.constant dense<0.000000e+00> : vector<32x512xf32>
    %95 = tpu.matmul %93, %94, %cst_53 {dimension_numbers = #tpu.dot_dimension_numbers<[1], [0], [0], [1], [0, 0, 1, 1], [], []>} : vector<32x32xbf16>, vector<32x512xbf16>, vector<32x512xf32> -> vector<32x512xf32>
    %c5_54 = arith.constant 5 : index
    %c0_55 = arith.constant 0 : index
    %c0_56 = arith.constant 0 : index
    %96 = vector.load %arg3[%c5_54, %c0_55, %c0_56] : memref<6x32x1xf32, #tpu.memory_space<vmem>>, vector<1x32x1xf32>
    %97 = vector.shape_cast %96 : vector<1x32x1xf32> to vector<32x1xf32>
    %98 = vector.broadcast %97 : vector<32x1xf32> to vector<32x512xf32>
    %99 = arith.addf %95, %98 : vector<32x512xf32>
    %100 = vector.extract_strided_slice %99 {offsets = [0, 0], sizes = [1, 512], strides = [1, 1]} : vector<32x512xf32> to vector<1x512xf32>
    %c0_57 = arith.constant 0 : index
    %c0_58 = arith.constant 0 : index
    %101 = vector.load %arg4[%c0_57, %c0_58] : memref<1x512xf32, #tpu.memory_space<vmem>>, vector<1x512xf32>
    tpu.vector_store %arg4[%c0_57, %c0_58], %100 {strides = array<i32>} : memref<1x512xf32, #tpu.memory_space<vmem>>, vector<1x512xf32>,
    return
  }
  func.func @transform_0(%arg0: i32) -> (i32, i32) {
    %c0_i32 = arith.constant 0 : i32
    %c0_i32_0 = arith.constant 0 : i32
    return %c0_i32, %arg0 : i32, i32
  }
  func.func @transform_1(%arg0: i32) -> (i32, i32, i32) {
    %c0_i32 = arith.constant 0 : i32
    %c0_i32_0 = arith.constant 0 : i32
    %c0_i32_1 = arith.constant 0 : i32
    %c0_i32_2 = arith.constant 0 : i32
    return %c0_i32, %c0_i32_0, %c0_i32_1 : i32, i32, i32
  }
  func.func @transform_2(%arg0: i32) -> (i32, i32, i32) {
    %c0_i32 = arith.constant 0 : i32
    %c0_i32_0 = arith.constant 0 : i32
    %c0_i32_1 = arith.constant 0 : i32
    %c0_i32_2 = arith.constant 0 : i32
    return %c0_i32, %c0_i32_0, %c0_i32_1 : i32, i32, i32
  }
  func.func @transform_3(%arg0: i32) -> (i32, i32) {
    %c0_i32 = arith.constant 0 : i32
    %c0_i32_0 = arith.constant 0 : i32
    return %c0_i32, %arg0 : i32, i32
  }
}

</mosaic_0001>

<bundles_post_ra>
// kernel: forward.1
= control target key start
LH: loop header
LB: loop body
LE: loop exit
PB: predicated region body
PF: predicated region fallthrough
CT: control target
= control target key end

     0   :  { %8 = vsyncpa [#allocation3], 0  ;;  %s2487_s0 = inlined_call_operand.vmem [shape: f32[8,1024], index: 0, kind: input, shape index: {}]   ;;  %s2488_s1 = inlined_call_operand.hbm [shape: bf16[6,32,32], index: 1, kind: input, shape index: {}]   ;;  %s2489_s2 = inlined_call_operand.hbm [shape: f32[6,32,1], index: 2, kind: input, shape index: {}]   ;;  %s2490_s3 = inlined_call_operand.vmem [shape: f32[1,1024], index: 3, kind: output, shape index: {}]  }
   0x1   :  { %9 = vsyncpa [#allocation5], 0  ;;  %s2344_s12 = smov 0  }
   0x2 LB: > { %s2316_s13 = smov [#allocation2]   ;;  %s1827_s15 = sadd.s32 4294967295, %s2314_s12   ;;  %s2314_s12 = sphi %s2344_s12, %s15_s12  }
   0x3   : > { %s126_s14 = sshll.u32 %s2316_s13, 4  ;;  %p1829_p0 = scmp.ge.s32.totalorder %s2314_s12, 1  ;;  %s127_s14 = int_to_ptr.vmem [resolvable:$true] %s126_s14 }
   0x4   : > { %p114_p1 = scmp.lt.s32.totalorder %s2314_s12, 3  ;;  %p2358_p3 = scmp.eq.s32.totalorder %s1827_s15, 0 }
   0x5   : > { %s2317_s18 = smov [#allocation4]   ;;  %s2259_s21 = scalar_lea.vmem %s127_s14, 1536 }
   0x6   : > { %p2352_p2 = pnand %p1829_p0, %p114_p1  ;;  %s139_s19 = sshll.u32 %s2317_s18, 4  ;;  %s140_s19 = int_to_ptr.vmem [resolvable:$true] %s139_s19 }
   0x7   : > { %p2260_p7 = scmp.ne.s32.totalorder %s127_s14, %s2259_s21  ;;  %p2267_p10 = scmp.lt.s32.totalorder %s127_s14, %s127_s14 }
   0x8   : > { %p1887_p4 = pneg %p2352_p2  ;;  %p2268_p11 = scmp.lt.s32.totalorder %s2259_s21, %s2259_s21 }
   0xa   : > { %p2366_p5 = pnand %p2358_p3, %p1887_p4  ;;  %p2269_p12 = por %p2268_p11, %p2267_p10 }
   0xc   : > { %p2250_p6 = pneg %p2366_p5 }
   0xe   : > { %p2262_p8 = pnand %p2260_p7, %p2250_p6 }
  0x10   : > { %p2263_p9 = pneg %p2262_p8 }
  0x12   : > { %p2270_p13 = pnand %p2269_p12, %p2263_p9 }
  0x14   : > { %2273 = shalt.err (!%p2270_p13)
}
  0x15   : > { %s2318_s22 = smov 64   ;;  %s2319_s23 = smov 4  }
  0x16   : > { %1890 = dma.hbm_to_vmem [thread:$0]  (!%p2366_p5), %s2488_s1, 1536, %s127_s14, [#allocation3], %s2318_s22, %s2318_s22, %s2319_s23  }
  0x17   : > { %s2285_s26 = scalar_lea.vmem %s140_s19, 3072  ;;  %p2293_p7 = scmp.lt.s32.totalorder %s140_s19, %s140_s19 }
  0x18   : > { %p2286_p0 = scmp.ne.s32.totalorder %s140_s19, %s2285_s26  ;;  %p2294_p8 = scmp.lt.s32.totalorder %s2285_s26, %s2285_s26 }
  0x1a   : > { %p2288_p1 = pnand %p2286_p0, %p2250_p6  ;;  %p2295_p10 = por %p2294_p8, %p2293_p7 }
  0x1c   : > { %p2289_p4 = pneg %p2288_p1 }
  0x1e   : > { %p2296_p9 = pnand %p2295_p10, %p2289_p4 }
  0x20   : > { %2299 = shalt.err (!%p2296_p9)
}
  0x21   : > { %s2320_s27 = smov 128   ;;  %s2321_s28 = smov 8  }
  0x22   : > { %1893 = dma.hbm_to_vmem [thread:$0]  (!%p2366_p5), %s2489_s2, 3072, %s140_s19, [#allocation5], %s2320_s27, %s2320_s27, %s2321_s28  }
  0x23   : > { %164 = sbr.rel (%p2352_p2) target bundleno = 1549 (0x60d), region = 32 }
  0x28   : > { %2305 = dma.done.wait (%p2358_p3), [#allocation3], 1536  }
  0x29   : > { %2307 = vsyncadd (%p2358_p3), [#allocation3], 4294965760 }
  0x2a   : > { %2309 = dma.done.wait (%p2358_p3), [#allocation5], 3072  }
  0x2b   : > { %2311 = vsyncadd (%p2358_p3), [#allocation5], 4294964224  ;;  %s1836_s4 = sshll.u32 %s1827_s15, 2  ;;  %v2322_v0 = vmov 0   ;;  %vm256_vm0 = vcmask 1043456   ;;  %v1916_v10 = vld [vmem:[#allocation2] sm:$0xff]  }
  0x2c   : > { %p192_p6 = scmp.lt.s32.totalorder %s1836_s4, 7  ;;  %301 = vmatprep.mubr.bf16.mxu0 %v2322_v0  ;;  %354 = vmatprep.mubr.bf16.mxu1 %v2322_v0  ;;  %v217_v11 = vld [vmem:[#allocation4 + $0x10] sm:$0xff]  ;;  %vm249_vm1 = vcmask 64512   ;;  %v215_v13 = vld [vmem:[#allocation4] sm:$0xff]  ;;  %v218_v14 = vld [vmem:[#allocation4 + $0x18] sm:$0xff]  ;;  %vm535_vm2 = vcmask 261120  }
  0x2d   : > { %1914 = vset.pattern.permute.xlu0 %v2322_v0  ;;  %1915 = vset.pattern.permute.xlu1 %v2322_v0  ;;  %v216_v15 = vld [vmem:[#allocation4 + $0x8] sm:$0xff]  ;;  %v503_v17 = vld [vmem:[#allocation4 + $0x30] sm:$0xff]  ;;  %v504_v18 = vld [vmem:[#allocation4 + $0x38] sm:$0xff] }
  0x2e   : > { %s2495_s4 = smov (!%p192_p6, %s1836_s4), 7  ;;  %231 = vperm.xlu0 %1914, %v217_v11   ;;  %221 = vperm.xlu1 %1915, %v215_v13   ;;  %v1917_v16 = vld [vmem:[#allocation2 + $0x8] sm:$0xff]   ;;  %v501_v19 = vld [vmem:[#allocation4 + $0x20] sm:$0xff]  ;;  %v776_v21 = vld [vmem:[#allocation4 + $0x50] sm:$0xff] }
  0x2f   : > { %s1837_s5 = sshll.u32 %s2495_s4, 3  ;;  %v502_v20 = vld [vmem:[#allocation4 + $0x28] sm:$0xff]  ;;  %v777_v22 = vld [vmem:[#allocation4 + $0x58] sm:$0xff]  ;;  %v774_v23 = vld [vmem:[#allocation4 + $0x40] sm:$0xff]  ;;  %s200_s11 = scalar_lea.vmem %s2490_s3, %s2495_s4 }
  0x30   : > { %s195_s8 = scalar_lea.vmem %s2487_s0, %s1837_s5  ;;  %v775_v24 = vld [vmem:[#allocation4 + $0x48] sm:$0xff]  ;;  %v1048_v25 = vld [vmem:[#allocation4 + $0x70] sm:$0xff]  ;;  %v1049_v26 = vld [vmem:[#allocation4 + $0x78] sm:$0xff] }
  0x31   : > { %v204_v1 = vld [vmem:[%s195_s8 + $0x8] sm:$0xff]  ;;  %v206_v2 = vld [vmem:[%s195_s8 + $0x18] sm:$0xff]  ;;  %v203_v3 = vld [vmem:[%s195_s8] sm:$0xff] }
  0x32   : > { %v208_v4 = vpack.c.bf16 %v204_v1, %v204_v1  ;;  %v210_v5 = vpack.c.bf16 %v206_v2, %v206_v2  ;;  %v207_v6 = vpack.c.bf16 %v203_v3, %v203_v3  ;;  %v205_v7 = vld [vmem:[%s195_s8 + $0x10] sm:$0xff]  ;;  %236 = vperm.xlu0 %1914, %v218_v14   ;;  %226 = vperm.xlu1 %1915, %v216_v15   ;;  %v1046_v27 = vld [vmem:[#allocation4 + $0x60] sm:$0xff]  ;;  %v1047_v28 = vld [vmem:[#allocation4 + $0x68] sm:$0xff] }
  0x33   : > { %v209_v8 = vpack.c.bf16 %v205_v7, %v205_v7  ;;  %v1320_v29 = vld [vmem:[#allocation4 + $0x90] sm:$0xff]  ;;  %v1321_v30 = vld [vmem:[#allocation4 + $0x98] sm:$0xff]  ;;  %v1318_v31 = vld [vmem:[#allocation4 + $0x80] sm:$0xff] }
  0x34   : > { %1841 = vmatprep.subr.msk.bf16.mxu0 %vm256_vm0, %v208_v4  ;;  %1844 = vmatprep.subr.msk.bf16.mxu1 %vm256_vm0, %v210_v5  ;;  %v258_v9 = vsel %vm256_vm0, %v207_v6, 0  ;;  %v1319_v32 = vld [vmem:[#allocation4 + $0x88] sm:$0xff]  ;;  %v1590_v33 = vld [vmem:[#allocation4 + $0xa0] sm:$0xff] }
  0x35   : > { %284 = vmatpush1.bf16.msra.mxu0 %v258_v9  ;;  %v264_v12 = vsel %vm256_vm0, %v209_v8, 0 }
  0x36   : > { %337 = vmatpush1.bf16.msra.mxu1 %v264_v12  ;;  %517 = vperm.xlu0 %1914, %v503_v17  }
  0x37   : > { %522 = vperm.xlu1 %1915, %v504_v18  }
  0x38   : > { %1842 = vmatmul.mubr.msk.bf16.vlgmr.msra.gmra.mxu0 %vm249_vm1, %v1916_v10 }
  0x39   : > { %1845 = vmatmul.mubr.msk.bf16.vlgmr.msra.gmra.mxu1 %vm249_vm1, %v1916_v10  ;;  %311 = vmatprep.mubr.bf16.mxu0 %v2322_v0 }
  0x3a   : > { %364 = vmatprep.mubr.bf16.mxu1 %v2322_v0  ;;  %507 = vperm.xlu0 %1914, %v501_v19  }
  0x3b   : > { %512 = vperm.xlu1 %1915, %v502_v20  }
  0x3e   : > { %790 = vperm.xlu0 %1914, %v776_v21  }
  0x3f   : > { %795 = vperm.xlu1 %1915, %v777_v22  }
  0x40   : > { %1843 = vmatmul.mubr.msk.bf16.gmra.mxu0 %vm249_vm1, %v1917_v16 }
  0x41   : > { %1846 = vmatmul.mubr.msk.bf16.gmra.mxu1 %vm249_vm1, %v1917_v16  ;;  %574 = vmatprep.mubr.bf16.mxu0 %v2322_v0 }
  0x42   : > { %627 = vmatprep.mubr.bf16.mxu1 %v2322_v0  ;;  %780 = vperm.xlu0 %1914, %v774_v23  }
  0x43   : > { %785 = vperm.xlu1 %1915, %v775_v24  }
  0x46   : > { %1062 = vperm.xlu0 %1914, %v1048_v25  }
  0x47   : > { %1067 = vperm.xlu1 %1915, %v1049_v26  }
  0x4a   : > { %1052 = vperm.xlu0 %1914, %v1046_v27  }
  0x4b   : > { %1057 = vperm.xlu1 %1915, %v1047_v28  }
  0x4e   : > { %1334 = vperm.xlu0 %1914, %v1320_v29  }
  0x4f   : > { %1339 = vperm.xlu1 %1915, %v1321_v30  }
  0x52   : > { %1324 = vperm.xlu0 %1914, %v1318_v31  }
  0x53   : > { %1329 = vperm.xlu1 %1915, %v1319_v32  }
  0x56   : > { %1596 = vperm.xlu0 %1914, %v1590_v33  }
  0xa9   : > { %v222_v34 = vpop.permute.xlu1 %221  ;;  %v232_v51 = vpop.permute.xlu0 %231 }
  0xad   : > { %v227_v43 = vpop.permute.xlu1 %226  ;;  %v237_v13 = vpop.permute.xlu0 %236 }
  0xf8   : > { %v303_v35 = vpop.f32.mrf.mxu0 }
  0xf9   : > { %v304_v36 = vadd.f32 %v303_v35, %v222_v34  ;;  %v356_v37 = vpop.f32.mrf.mxu1 }
  0xfa   : > { %v357_v38 = vadd.f32 %v356_v37, %v222_v34  ;;  %v305_v39 = vpop.f32.mrf.mxu0 }
  0xfb   : > { %v375_v40 = vmul.f32 2.0, %v304_v36  ;;  %v306_v41 = vadd.f32 %v305_v39, %v222_v34  ;;  %v358_v42 = vpop.f32.mrf.mxu1 }
  0xfc   : > { %v377_v44 = vmul.f32 2.0, %v357_v38  ;;  %v359_v45 = vadd.f32 %v358_v42, %v222_v34  ;;  %v307_v46 = vpop.f32.mrf.mxu0 }
  0xfd   : > { %v391_v47 = vmul.f32 1.442695, %v375_v40  ;;  %v376_v48 = vmul.f32 2.0, %v306_v41  ;;  %v308_v49 = vadd.f32 %v307_v46, %v227_v43  ;;  %v360_v50 = vpop.f32.mrf.mxu1 }
  0xfe   : > { %v395_v52 = vmul.f32 1.442695, %v377_v44  ;;  %v378_v53 = vmul.f32 2.0, %v359_v45  ;;  %v361_v54 = vadd.f32 %v360_v50, %v227_v43  ;;  %v309_v55 = vpop.f32.mrf.mxu0 }
  0xff   : > { %1928 = vpow2.f32 %v391_v47  ;;  %v393_v56 = vmul.f32 1.442695, %v376_v48  ;;  %v379_v57 = vmul.f32 2.0, %v308_v49  ;;  %v310_v58 = vadd.f32 %v309_v55, %v227_v43  ;;  %v362_v59 = vpop.f32.mrf.mxu1 }
 0x100   : > { %1930 = vpow2.f32 %v395_v52  ;;  %v397_v60 = vmul.f32 1.442695, %v378_v53  ;;  %v381_v61 = vmul.f32 2.0, %v361_v54  ;;  %v363_v62 = vadd.f32 %v362_v59, %v227_v43  ;;  %v313_v63 = vpop.f32.mrf.mxu0 }
 0x101   : > { %1932 = vpow2.f32 %v393_v56  ;;  %v399_v1 = vmul.f32 1.442695, %v379_v57  ;;  %v380_v2 = vmul.f32 2.0, %v310_v58  ;;  %v314_v3 = vadd.f32 %v313_v63, %v232_v51  ;;  %v366_v4 = vpop.f32.mrf.mxu1 }
 0x102   : > { %1934 = vpow2.f32 %v397_v60  ;;  %v403_v5 = vmul.f32 1.442695, %v381_v61  ;;  %v382_v6 = vmul.f32 2.0, %v363_v62  ;;  %v367_v7 = vadd.f32 %v366_v4, %v232_v51  ;;  %v315_v8 = vpop.f32.mrf.mxu0 }
 0x103   : > { %1936 = vpow2.f32 %v399_v1  ;;  %v401_v9 = vmul.f32 1.442695, %v380_v2  ;;  %v383_v10 = vmul.f32 2.0, %v314_v3  ;;  %v316_v11 = vadd.f32 %v315_v8, %v232_v51  ;;  %v368_v12 = vpop.f32.mrf.mxu1 }
 0x104   : > { %1938 = vpow2.f32 %v403_v5  ;;  %v405_v14 = vmul.f32 1.442695, %v382_v6  ;;  %v385_v15 = vmul.f32 2.0, %v367_v7  ;;  %v369_v16 = vadd.f32 %v368_v12, %v232_v51  ;;  %v317_v17 = vpop.f32.mrf.mxu0 }
 0x105   : > { %1940 = vpow2.f32 %v401_v9  ;;  %v407_v18 = vmul.f32 1.442695, %v383_v10  ;;  %v384_v19 = vmul.f32 2.0, %v316_v11  ;;  %v318_v20 = vadd.f32 %v317_v17, %v237_v13  ;;  %v370_v21 = vpop.f32.mrf.mxu1 }
 0x106   : > { %1942 = vpow2.f32 %v405_v14  ;;  %v411_v22 = vmul.f32 1.442695, %v385_v15  ;;  %v386_v23 = vmul.f32 2.0, %v369_v16  ;;  %v371_v24 = vadd.f32 %v370_v21, %v237_v13  ;;  %v319_v25 = vpop.f32.mrf.mxu0 }
 0x107   : > { %1944 = vpow2.f32 %v407_v18  ;;  %v409_v26 = vmul.f32 1.442695, %v384_v19  ;;  %v387_v27 = vmul.f32 2.0, %v318_v20  ;;  %v320_v28 = vadd.f32 %v319_v25, %v237_v13  ;;  %v372_v29 = vpop.f32.mrf.mxu1 }
 0x108   : > { %1946 = vpow2.f32 %v411_v22  ;;  %v413_v30 = vmul.f32 1.442695, %v386_v23  ;;  %v389_v31 = vmul.f32 2.0, %v371_v24  ;;  %v373_v32 = vadd.f32 %v372_v29, %v237_v13 }
 0x109   : > { %1948 = vpow2.f32 %v409_v26  ;;  %v415_v33 = vmul.f32 1.442695, %v387_v27  ;;  %v388_v34 = vmul.f32 2.0, %v320_v28 }
 0x10a   : > { %1950 = vpow2.f32 %v413_v30  ;;  %v419_v35 = vmul.f32 1.442695, %v389_v31  ;;  %v390_v36 = vmul.f32 2.0, %v373_v32 }
 0x10b   : > { %1952 = vpow2.f32 %v415_v33  ;;  %v417_v37 = vmul.f32 1.442695, %v388_v34 }
 0x10c   : > { %v1929_v38 = vpop.eup %1928  ;;  %1954 = vpow2.f32 %v419_v35  ;;  %v421_v39 = vmul.f32 1.442695, %v390_v36 }
 0x10d   : > { %v1931_v40 = vpop.eup %1930  ;;  %v423_v41 = vadd.f32 1.0, %v1929_v38  ;;  %1956 = vpow2.f32 %v417_v37 }
 0x10e   : > { %v1933_v42 = vpop.eup %1932  ;;  %1958 = vpow2.f32 %v421_v39  ;;  %v425_v5 = vadd.f32 1.0, %v1931_v40 }
 0x10f   : > { %v1935_v43 = vpop.eup %1934  ;;  %v424_v44 = vadd.f32 1.0, %v1933_v42  ;;  %1960 = vrcp.f32 %v423_v41 }
 0x110   : > { %v1937_v45 = vpop.eup %1936  ;;  %v426_v46 = vadd.f32 1.0, %v1935_v43 }
 0x111   : > { %v1939_v47 = vpop.eup %1938  ;;  %1962 = vrcp.f32 %v424_v44  ;;  %v427_v48 = vadd.f32 1.0, %v1937_v45 }
 0x112   : > { %v1941_v49 = vpop.eup %1940  ;;  %1964 = vrcp.f32 %v426_v46  ;;  %v429_v50 = vadd.f32 1.0, %v1939_v47 }
 0x113   : > { %v1943_v51 = vpop.eup %1942  ;;  %1966 = vrcp.f32 %v427_v48  ;;  %v428_v52 = vadd.f32 1.0, %v1941_v49 }
 0x114   : > { %v1945_v53 = vpop.eup %1944  ;;  %1968 = vrcp.f32 %v429_v50  ;;  %v430_v54 = vadd.f32 1.0, %v1943_v51 }
 0x115   : > { %v1947_v55 = vpop.eup %1946  ;;  %1970 = vrcp.f32 %v428_v52  ;;  %v431_v56 = vadd.f32 1.0, %v1945_v53 }
 0x116   : > { %v1949_v57 = vpop.eup %1948  ;;  %1972 = vrcp.f32 %v430_v54  ;;  %v433_v58 = vadd.f32 1.0, %v1947_v55 }
 0x117   : > { %v1951_v59 = vpop.eup %1950  ;;  %1974 = vrcp.f32 %v431_v56  ;;  %v432_v60 = vadd.f32 1.0, %v1949_v57 }
 0x118   : > { %v1953_v61 = vpop.eup %1952  ;;  %1976 = vrcp.f32 %v433_v58  ;;  %v434_v62 = vadd.f32 1.0, %v1951_v59 }
 0x119   : > { %v1955_v63 = vpop.eup %1954  ;;  %1978 = vrcp.f32 %v432_v60  ;;  %v435_v1 = vadd.f32 1.0, %v1953_v61 }
 0x11a   : > { %v1957_v2 = vpop.eup %1956  ;;  %1980 = vrcp.f32 %v434_v62  ;;  %v437_v3 = vadd.f32 1.0, %v1955_v63 }
 0x11b   : > { %v1959_v4 = vpop.eup %1958  ;;  %1982 = vrcp.f32 %v435_v1  ;;  %v436_v6 = vadd.f32 1.0, %v1957_v2  ;;  %v1918_v1 = vld [vmem:[#allocation2 + $0x10] sm:$0xff]   ;;  %v1919_v2 = vld [vmem:[#allocation2 + $0x18] sm:$0xff]  }
 0x11c   : > { %1984 = vrcp.f32 %v437_v3  ;;  %v438_v7 = vadd.f32 1.0, %v1959_v4  ;;  %v1961_v8 = vpop.eup %1960  ;;  %v518_v3 = vpop.permute.xlu0 %517 }
 0x11d   : > { %1986 = vrcp.f32 %v436_v6  ;;  %v455_v21 = vmul.f32 2.0, %v1961_v8  ;;  %v2426_v4 = vpop.permute.xlu1 %522 }
 0x11e   : > { %v1963_v9 = vpop.eup %1962  ;;  %1988 = vrcp.f32 %v438_v7 }
 0x11f   : > { %v1965_v10 = vpop.eup %1964  ;;  %1990 = vrcp.f32 %v425_v5  ;;  %v456_v33 = vmul.f32 2.0, %v1963_v9  ;;  %v471_v60 = vsub.f32 1.0, %v455_v21 }
 0x120   : > { %v1967_v11 = vpop.eup %1966  ;;  %v458_v34 = vmul.f32 2.0, %v1965_v10  ;;  %v508_v5 = vpop.permute.xlu0 %507 }
 0x121   : > { %v1969_v12 = vpop.eup %1968  ;;  %v459_v36 = vmul.f32 2.0, %v1967_v11  ;;  %v472_v51 = vsub.f32 1.0, %v456_v33 }
 0x122   : > { %v1971_v13 = vpop.eup %1970  ;;  %v461_v37 = vmul.f32 2.0, %v1969_v12  ;;  %v474_v54 = vsub.f32 1.0, %v458_v34 }
 0x123   : > { %v1973_v14 = vpop.eup %1972  ;;  %v460_v24 = vmul.f32 2.0, %v1971_v13  ;;  %v475_v55 = vsub.f32 1.0, %v459_v36 }
 0x124   : > { %v1975_v15 = vpop.eup %1974  ;;  %v462_v29 = vmul.f32 2.0, %v1973_v14  ;;  %v477_v58 = vsub.f32 1.0, %v461_v37  ;;  %v513_v14 = vpop.permute.xlu1 %512 }
 0x125   : > { %v1977_v16 = vpop.eup %1976  ;;  %v463_v26 = vmul.f32 2.0, %v1975_v15  ;;  %v476_v43 = vsub.f32 1.0, %v460_v24  ;;  %v492_v62 = vpack.c.bf16 %v475_v55, %v471_v60 }
 0x126   : > { %v1979_v17 = vpop.eup %1978  ;;  %v465_v31 = vmul.f32 2.0, %v1977_v16  ;;  %v478_v47 = vsub.f32 1.0, %v462_v29 }
 0x127   : > { %v1981_v18 = vpop.eup %1980  ;;  %v464_v23 = vmul.f32 2.0, %v1979_v17  ;;  %v479_v46 = vsub.f32 1.0, %v463_v26  ;;  %v493_v57 = vpack.c.bf16 %v476_v43, %v472_v51 }
 0x128   : > { %v1983_v19 = vpop.eup %1982  ;;  %v466_v28 = vmul.f32 2.0, %v1981_v18  ;;  %v481_v50 = vsub.f32 1.0, %v465_v31  ;;  %v495_v59 = vpack.c.bf16 %v478_v47, %v474_v54 }
 0x129   : > { %v1985_v20 = vpop.eup %1984  ;;  %v467_v22 = vmul.f32 2.0, %v1983_v19  ;;  %v480_v40 = vsub.f32 1.0, %v464_v23 }
 0x12a   : > { %v1987_v25 = vpop.eup %1986  ;;  %v469_v27 = vmul.f32 2.0, %v1985_v20  ;;  %v482_v44 = vsub.f32 1.0, %v466_v28 }
 0x12b   : > { %v1989_v30 = vpop.eup %1988  ;;  %v468_v32 = vmul.f32 2.0, %v1987_v25  ;;  %v483_v39 = vsub.f32 1.0, %v467_v22 }
 0x12c   : > { %v1991_v35 = vpop.eup %1990  ;;  %v470_v38 = vmul.f32 2.0, %v1989_v30  ;;  %v485_v42 = vsub.f32 1.0, %v469_v27 }
 0x12d   : > { %v484_v41 = vsub.f32 1.0, %v468_v32  ;;  %v457_v48 = vmul.f32 2.0, %v1991_v35  ;;  %v496_v53 = vpack.c.bf16 %v483_v39, %v479_v46 }
 0x12e   : > { %v486_v45 = vsub.f32 1.0, %v470_v38  ;;  %v498_v56 = vpack.c.bf16 %v485_v42, %v481_v50 }
 0x12f   : > { %v497_v49 = vpack.c.bf16 %v484_v41, %v480_v40  ;;  %v473_v61 = vsub.f32 1.0, %v457_v48 }
 0x130   : > { %v499_v52 = vpack.c.bf16 %v486_v45, %v482_v44 }
 0x131   : > { %554 = vmatprep.subr.bf16.mxu0 %v497_v49  ;;  %v494_v63 = vpack.c.bf16 %v477_v58, %v473_v61 }
 0x132   : > { %607 = vmatprep.subr.bf16.mxu1 %v499_v52  ;;  %555 = vmatpush1.bf16.msra.mxu0 %v496_v53 }
 0x133   : > { %608 = vmatpush1.bf16.msra.mxu1 %v498_v56  ;;  %556 = vmatprep.subr.bf16.mxu0 %v493_v57 }
 0x134   : > { %609 = vmatprep.subr.bf16.mxu1 %v495_v59 }
 0x136   : > { %557 = vmatpush1.bf16.msra.mxu0 %v492_v62 }
 0x137   : > { %610 = vmatpush1.bf16.msra.mxu1 %v494_v63 }
 0x139   : > { %1849 = vmatmul.mubr.msk.bf16.vlgmr.msra.gmra.mxu0 %vm535_vm2, %v1918_v1 }
 0x13a   : > { %1851 = vmatmul.mubr.msk.bf16.vlgmr.msra.gmra.mxu1 %vm535_vm2, %v1918_v1  ;;  %584 = vmatprep.mubr.bf16.mxu0 %v2322_v0 }
 0x13b   : > { %637 = vmatprep.mubr.bf16.mxu1 %v2322_v0 }
 0x141   : > { %1850 = vmatmul.mubr.msk.bf16.gmra.mxu0 %vm535_vm2, %v1919_v2 }
 0x142   : > { %1852 = vmatmul.mubr.msk.bf16.gmra.mxu1 %vm535_vm2, %v1919_v2  ;;  %846 = vmatprep.mubr.bf16.mxu0 %v2322_v0 }
 0x143   : > { %899 = vmatprep.mubr.bf16.mxu1 %v2322_v0 }
 0x1f9   : > { %v576_v6 = vpop.f32.mrf.mxu0 }
 0x1fa   : > { %v577_v7 = vadd.f32 %v576_v6, %v508_v5  ;;  %v629_v8 = vpop.f32.mrf.mxu1 }
 0x1fb   : > { %v630_v9 = vadd.f32 %v629_v8, %v508_v5  ;;  %v578_v10 = vpop.f32.mrf.mxu0 }
 0x1fc   : > { %v648_v11 = vmul.f32 2.0, %v577_v7  ;;  %v579_v12 = vadd.f32 %v578_v10, %v508_v5  ;;  %v631_v13 = vpop.f32.mrf.mxu1 }
 0x1fd   : > { %v650_v15 = vmul.f32 2.0, %v630_v9  ;;  %v632_v16 = vadd.f32 %v631_v13, %v508_v5  ;;  %v580_v17 = vpop.f32.mrf.mxu0 }
 0x1fe   : > { %v664_v18 = vmul.f32 1.442695, %v648_v11  ;;  %v649_v19 = vmul.f32 2.0, %v579_v12  ;;  %v581_v20 = vadd.f32 %v580_v17, %v513_v14  ;;  %v633_v21 = vpop.f32.mrf.mxu1 }
 0x1ff   : > { %v668_v22 = vmul.f32 1.442695, %v650_v15  ;;  %v651_v23 = vmul.f32 2.0, %v632_v16  ;;  %v634_v24 = vadd.f32 %v633_v21, %v513_v14  ;;  %v582_v25 = vpop.f32.mrf.mxu0 }
 0x200   : > { %1992 = vpow2.f32 %v664_v18  ;;  %v666_v26 = vmul.f32 1.442695, %v649_v19  ;;  %v652_v27 = vmul.f32 2.0, %v581_v20  ;;  %v583_v28 = vadd.f32 %v582_v25, %v513_v14  ;;  %v635_v29 = vpop.f32.mrf.mxu1 }
 0x201   : > { %1994 = vpow2.f32 %v668_v22  ;;  %v670_v30 = vmul.f32 1.442695, %v651_v23  ;;  %v654_v31 = vmul.f32 2.0, %v634_v24  ;;  %v636_v32 = vadd.f32 %v635_v29, %v513_v14  ;;  %v586_v33 = vpop.f32.mrf.mxu0 }
 0x202   : > { %1996 = vpow2.f32 %v666_v26  ;;  %v672_v34 = vmul.f32 1.442695, %v652_v27  ;;  %v653_v35 = vmul.f32 2.0, %v583_v28  ;;  %v587_v36 = vadd.f32 %v586_v33, %v518_v3  ;;  %v639_v37 = vpop.f32.mrf.mxu1 }
 0x203   : > { %1998 = vpow2.f32 %v670_v30  ;;  %v676_v38 = vmul.f32 1.442695, %v654_v31  ;;  %v655_v39 = vmul.f32 2.0, %v636_v32  ;;  %v640_v40 = vadd.f32 %v639_v37, %v518_v3  ;;  %v588_v41 = vpop.f32.mrf.mxu0 }
 0x204   : > { %2000 = vpow2.f32 %v672_v34  ;;  %v674_v42 = vmul.f32 1.442695, %v653_v35  ;;  %v656_v43 = vmul.f32 2.0, %v587_v36  ;;  %v589_v44 = vadd.f32 %v588_v41, %v518_v3  ;;  %v641_v45 = vpop.f32.mrf.mxu1 }
 0x205   : > { %2002 = vpow2.f32 %v676_v38  ;;  %v678_v46 = vmul.f32 1.442695, %v655_v39  ;;  %v658_v47 = vmul.f32 2.0, %v640_v40  ;;  %v642_v48 = vadd.f32 %v641_v45, %v518_v3  ;;  %v590_v49 = vpop.f32.mrf.mxu0 }
 0x206   : > { %2004 = vpow2.f32 %v674_v42  ;;  %v680_v50 = vmul.f32 1.442695, %v656_v43  ;;  %v657_v51 = vmul.f32 2.0, %v589_v44  ;;  %v591_v52 = vadd.f32 %v590_v49, %v2426_v4  ;;  %v643_v53 = vpop.f32.mrf.mxu1 }
 0x207   : > { %2006 = vpow2.f32 %v678_v46  ;;  %v684_v54 = vmul.f32 1.442695, %v658_v47  ;;  %v659_v55 = vmul.f32 2.0, %v642_v48  ;;  %v644_v56 = vadd.f32 %v643_v53, %v2426_v4  ;;  %v592_v57 = vpop.f32.mrf.mxu0 }
 0x208   : > { %2008 = vpow2.f32 %v680_v50  ;;  %v682_v58 = vmul.f32 1.442695, %v657_v51  ;;  %v660_v59 = vmul.f32 2.0, %v591_v52  ;;  %v593_v60 = vadd.f32 %v592_v57, %v2426_v4  ;;  %v645_v61 = vpop.f32.mrf.mxu1 }
 0x209   : > { %2010 = vpow2.f32 %v684_v54  ;;  %v686_v62 = vmul.f32 1.442695, %v659_v55  ;;  %v662_v63 = vmul.f32 2.0, %v644_v56  ;;  %v646_v1 = vadd.f32 %v645_v61, %v2426_v4 }
 0x20a   : > { %2012 = vpow2.f32 %v682_v58  ;;  %v688_v2 = vmul.f32 1.442695, %v660_v59  ;;  %v661_v3 = vmul.f32 2.0, %v593_v60 }
 0x20b   : > { %2014 = vpow2.f32 %v686_v62  ;;  %v692_v5 = vmul.f32 1.442695, %v662_v63  ;;  %v663_v6 = vmul.f32 2.0, %v646_v1 }
 0x20c   : > { %2016 = vpow2.f32 %v688_v2  ;;  %v690_v7 = vmul.f32 1.442695, %v661_v3 }
 0x20d   : > { %v1993_v8 = vpop.eup %1992  ;;  %2018 = vpow2.f32 %v692_v5  ;;  %v694_v9 = vmul.f32 1.442695, %v663_v6 }
 0x20e   : > { %v1995_v10 = vpop.eup %1994  ;;  %v696_v11 = vadd.f32 1.0, %v1993_v8  ;;  %2020 = vpow2.f32 %v690_v7 }
 0x20f   : > { %v1997_v12 = vpop.eup %1996  ;;  %2022 = vpow2.f32 %v694_v9  ;;  %v698_v37 = vadd.f32 1.0, %v1995_v10 }
 0x210   : > { %v1999_v13 = vpop.eup %1998  ;;  %v697_v14 = vadd.f32 1.0, %v1997_v12  ;;  %2024 = vrcp.f32 %v696_v11 }
 0x211   : > { %v2001_v15 = vpop.eup %2000  ;;  %v699_v4 = vadd.f32 1.0, %v1999_v13 }
 0x212   : > { %v2003_v16 = vpop.eup %2002  ;;  %2026 = vrcp.f32 %v697_v14  ;;  %v700_v17 = vadd.f32 1.0, %v2001_v15 }
 0x213   : > { %v2005_v18 = vpop.eup %2004  ;;  %2028 = vrcp.f32 %v699_v4  ;;  %v702_v19 = vadd.f32 1.0, %v2003_v16 }
 0x214   : > { %v2007_v20 = vpop.eup %2006  ;;  %2030 = vrcp.f32 %v700_v17  ;;  %v701_v21 = vadd.f32 1.0, %v2005_v18 }
 0x215   : > { %v2009_v22 = vpop.eup %2008  ;;  %2032 = vrcp.f32 %v702_v19  ;;  %v703_v23 = vadd.f32 1.0, %v2007_v20 }
 0x216   : > { %v2011_v24 = vpop.eup %2010  ;;  %2034 = vrcp.f32 %v701_v21  ;;  %v704_v25 = vadd.f32 1.0, %v2009_v22 }
 0x217   : > { %v2013_v26 = vpop.eup %2012  ;;  %2036 = vrcp.f32 %v703_v23  ;;  %v706_v27 = vadd.f32 1.0, %v2011_v24 }
 0x218   : > { %v2015_v28 = vpop.eup %2014  ;;  %2038 = vrcp.f32 %v704_v25  ;;  %v705_v29 = vadd.f32 1.0, %v2013_v26 }
 0x219   : > { %v2017_v30 = vpop.eup %2016  ;;  %2040 = vrcp.f32 %v706_v27  ;;  %v707_v31 = vadd.f32 1.0, %v2015_v28 }
 0x21a   : > { %v2019_v32 = vpop.eup %2018  ;;  %2042 = vrcp.f32 %v705_v29  ;;  %v708_v33 = vadd.f32 1.0, %v2017_v30 }
 0x21b   : > { %v2021_v34 = vpop.eup %2020  ;;  %2044 = vrcp.f32 %v707_v31  ;;  %v710_v35 = vadd.f32 1.0, %v2019_v32 }
 0x21c   : > { %v2023_v36 = vpop.eup %2022  ;;  %2046 = vrcp.f32 %v708_v33  ;;  %v709_v38 = vadd.f32 1.0, %v2021_v34  ;;  %v1920_v33 = vld [vmem:[#allocation2 + $0x20] sm:$0xff]   ;;  %v1921_v34 = vld [vmem:[#allocation2 + $0x28] sm:$0xff]  }
 0x21d   : > { %2048 = vrcp.f32 %v710_v35  ;;  %v711_v39 = vadd.f32 1.0, %v2023_v36  ;;  %v2025_v40 = vpop.eup %2024  ;;  %v791_v35 = vpop.permute.xlu0 %790 }
 0x21e   : > { %2050 = vrcp.f32 %v709_v38  ;;  %v728_v53 = vmul.f32 2.0, %v2025_v40  ;;  %v2440_v36 = vpop.permute.xlu1 %795 }
 0x21f   : > { %v2027_v41 = vpop.eup %2026  ;;  %2052 = vrcp.f32 %v711_v39 }
 0x220   : > { %v2029_v42 = vpop.eup %2028  ;;  %2054 = vrcp.f32 %v698_v37  ;;  %v729_v2 = vmul.f32 2.0, %v2027_v41  ;;  %v744_v29 = vsub.f32 1.0, %v728_v53 }
 0x221   : > { %v2031_v43 = vpop.eup %2030  ;;  %v731_v3 = vmul.f32 2.0, %v2029_v42  ;;  %v781_v37 = vpop.permute.xlu0 %780 }
 0x222   : > { %v2033_v44 = vpop.eup %2032  ;;  %v732_v6 = vmul.f32 2.0, %v2031_v43  ;;  %v745_v20 = vsub.f32 1.0, %v729_v2 }
 0x223   : > { %v2035_v45 = vpop.eup %2034  ;;  %v734_v7 = vmul.f32 2.0, %v2033_v44  ;;  %v747_v23 = vsub.f32 1.0, %v731_v3 }
 0x224   : > { %v2037_v46 = vpop.eup %2036  ;;  %v733_v56 = vmul.f32 2.0, %v2035_v45  ;;  %v748_v24 = vsub.f32 1.0, %v732_v6 }
 0x225   : > { %v2039_v47 = vpop.eup %2038  ;;  %v735_v61 = vmul.f32 2.0, %v2037_v46  ;;  %v750_v27 = vsub.f32 1.0, %v734_v7  ;;  %v786_v46 = vpop.permute.xlu1 %785 }
 0x226   : > { %v2041_v48 = vpop.eup %2040  ;;  %v736_v58 = vmul.f32 2.0, %v2039_v47  ;;  %v749_v13 = vsub.f32 1.0, %v733_v56  ;;  %v765_v31 = vpack.c.bf16 %v748_v24, %v744_v29 }
 0x227   : > { %v2043_v49 = vpop.eup %2042  ;;  %v738_v63 = vmul.f32 2.0, %v2041_v48  ;;  %v751_v16 = vsub.f32 1.0, %v735_v61 }
 0x228   : > { %v2045_v50 = vpop.eup %2044  ;;  %v737_v55 = vmul.f32 2.0, %v2043_v49  ;;  %v752_v4 = vsub.f32 1.0, %v736_v58  ;;  %v766_v26 = vpack.c.bf16 %v749_v13, %v745_v20 }
 0x229   : > { %v2047_v51 = vpop.eup %2046  ;;  %v739_v60 = vmul.f32 2.0, %v2045_v50  ;;  %v754_v19 = vsub.f32 1.0, %v738_v63  ;;  %v768_v28 = vpack.c.bf16 %v751_v16, %v747_v23 }
 0x22a   : > { %v2049_v52 = vpop.eup %2048  ;;  %v740_v54 = vmul.f32 2.0, %v2047_v51  ;;  %v753_v10 = vsub.f32 1.0, %v737_v55 }
 0x22b   : > { %v2051_v57 = vpop.eup %2050  ;;  %v742_v59 = vmul.f32 2.0, %v2049_v52  ;;  %v755_v14 = vsub.f32 1.0, %v739_v60 }
 0x22c   : > { %v2053_v62 = vpop.eup %2052  ;;  %v741_v1 = vmul.f32 2.0, %v2051_v57  ;;  %v756_v9 = vsub.f32 1.0, %v740_v54 }
 0x22d   : > { %v2055_v5 = vpop.eup %2054  ;;  %v743_v8 = vmul.f32 2.0, %v2053_v62  ;;  %v758_v12 = vsub.f32 1.0, %v742_v59 }
 0x22e   : > { %v757_v11 = vsub.f32 1.0, %v741_v1  ;;  %v730_v17 = vmul.f32 2.0, %v2055_v5  ;;  %v769_v22 = vpack.c.bf16 %v756_v9, %v752_v4 }
 0x22f   : > { %v759_v15 = vsub.f32 1.0, %v743_v8  ;;  %v771_v25 = vpack.c.bf16 %v758_v12, %v754_v19 }
 0x230   : > { %v770_v18 = vpack.c.bf16 %v757_v11, %v753_v10  ;;  %v746_v30 = vsub.f32 1.0, %v730_v17 }
 0x231   : > { %v772_v21 = vpack.c.bf16 %v759_v15, %v755_v14 }
 0x232   : > { %826 = vmatprep.subr.bf16.mxu0 %v770_v18  ;;  %v767_v32 = vpack.c.bf16 %v750_v27, %v746_v30 }
 0x233   : > { %879 = vmatprep.subr.bf16.mxu1 %v772_v21  ;;  %827 = vmatpush1.bf16.msra.mxu0 %v769_v22 }
 0x234   : > { %880 = vmatpush1.bf16.msra.mxu1 %v771_v25  ;;  %828 = vmatprep.subr.bf16.mxu0 %v766_v26 }
 0x235   : > { %881 = vmatprep.subr.bf16.mxu1 %v768_v28 }
 0x237   : > { %829 = vmatpush1.bf16.msra.mxu0 %v765_v31 }
 0x238   : > { %882 = vmatpush1.bf16.msra.mxu1 %v767_v32 }
 0x23a   : > { %1855 = vmatmul.mubr.msk.bf16.vlgmr.msra.gmra.mxu0 %vm535_vm2, %v1920_v33 }
 0x23b   : > { %1857 = vmatmul.mubr.msk.bf16.vlgmr.msra.gmra.mxu1 %vm535_vm2, %v1920_v33  ;;  %856 = vmatprep.mubr.bf16.mxu0 %v2322_v0 }
 0x23c   : > { %909 = vmatprep.mubr.bf16.mxu1 %v2322_v0 }
 0x242   : > { %1856 = vmatmul.mubr.msk.bf16.gmra.mxu0 %vm535_vm2, %v1921_v34 }
 0x243   : > { %1858 = vmatmul.mubr.msk.bf16.gmra.mxu1 %vm535_vm2, %v1921_v34  ;;  %1118 = vmatprep.mubr.bf16.mxu0 %v2322_v0 }
 0x244   : > { %1171 = vmatprep.mubr.bf16.mxu1 %v2322_v0 }
 0x2fa   : > { %v848_v38 = vpop.f32.mrf.mxu0 }
 0x2fb   : > { %v849_v39 = vadd.f32 %v848_v38, %v781_v37  ;;  %v901_v40 = vpop.f32.mrf.mxu1 }
 0x2fc   : > { %v902_v41 = vadd.f32 %v901_v40, %v781_v37  ;;  %v850_v42 = vpop.f32.mrf.mxu0 }
 0x2fd   : > { %v920_v43 = vmul.f32 2.0, %v849_v39  ;;  %v851_v44 = vadd.f32 %v850_v42, %v781_v37  ;;  %v903_v45 = vpop.f32.mrf.mxu1 }
 0x2fe   : > { %v922_v47 = vmul.f32 2.0, %v902_v41  ;;  %v904_v48 = vadd.f32 %v903_v45, %v781_v37  ;;  %v852_v49 = vpop.f32.mrf.mxu0 }
 0x2ff   : > { %v936_v50 = vmul.f32 1.442695, %v920_v43  ;;  %v921_v51 = vmul.f32 2.0, %v851_v44  ;;  %v853_v52 = vadd.f32 %v852_v49, %v786_v46  ;;  %v905_v53 = vpop.f32.mrf.mxu1 }
 0x300   : > { %v940_v54 = vmul.f32 1.442695, %v922_v47  ;;  %v923_v55 = vmul.f32 2.0, %v904_v48  ;;  %v906_v56 = vadd.f32 %v905_v53, %v786_v46  ;;  %v854_v57 = vpop.f32.mrf.mxu0 }
 0x301   : > { %2056 = vpow2.f32 %v936_v50  ;;  %v938_v58 = vmul.f32 1.442695, %v921_v51  ;;  %v924_v59 = vmul.f32 2.0, %v853_v52  ;;  %v855_v60 = vadd.f32 %v854_v57, %v786_v46  ;;  %v907_v61 = vpop.f32.mrf.mxu1 }
 0x302   : > { %2058 = vpow2.f32 %v940_v54  ;;  %v942_v62 = vmul.f32 1.442695, %v923_v55  ;;  %v926_v63 = vmul.f32 2.0, %v906_v56  ;;  %v908_v1 = vadd.f32 %v907_v61, %v786_v46  ;;  %v858_v2 = vpop.f32.mrf.mxu0 }
 0x303   : > { %2060 = vpow2.f32 %v938_v58  ;;  %v944_v3 = vmul.f32 1.442695, %v924_v59  ;;  %v925_v5 = vmul.f32 2.0, %v855_v60  ;;  %v859_v6 = vadd.f32 %v858_v2, %v791_v35  ;;  %v911_v7 = vpop.f32.mrf.mxu1 }
 0x304   : > { %2062 = vpow2.f32 %v942_v62  ;;  %v948_v8 = vmul.f32 1.442695, %v926_v63  ;;  %v927_v9 = vmul.f32 2.0, %v908_v1  ;;  %v912_v10 = vadd.f32 %v911_v7, %v791_v35  ;;  %v860_v11 = vpop.f32.mrf.mxu0 }
 0x305   : > { %2064 = vpow2.f32 %v944_v3  ;;  %v946_v12 = vmul.f32 1.442695, %v925_v5  ;;  %v928_v13 = vmul.f32 2.0, %v859_v6  ;;  %v861_v14 = vadd.f32 %v860_v11, %v791_v35  ;;  %v913_v15 = vpop.f32.mrf.mxu1 }
 0x306   : > { %2066 = vpow2.f32 %v948_v8  ;;  %v950_v4 = vmul.f32 1.442695, %v927_v9  ;;  %v930_v16 = vmul.f32 2.0, %v912_v10  ;;  %v914_v17 = vadd.f32 %v913_v15, %v791_v35  ;;  %v862_v18 = vpop.f32.mrf.mxu0 }
 0x307   : > { %2068 = vpow2.f32 %v946_v12  ;;  %v952_v19 = vmul.f32 1.442695, %v928_v13  ;;  %v929_v20 = vmul.f32 2.0, %v861_v14  ;;  %v863_v21 = vadd.f32 %v862_v18, %v2440_v36  ;;  %v915_v22 = vpop.f32.mrf.mxu1 }
 0x308   : > { %2070 = vpow2.f32 %v950_v4  ;;  %v956_v23 = vmul.f32 1.442695, %v930_v16  ;;  %v931_v24 = vmul.f32 2.0, %v914_v17  ;;  %v916_v25 = vadd.f32 %v915_v22, %v2440_v36  ;;  %v864_v26 = vpop.f32.mrf.mxu0 }
 0x309   : > { %2072 = vpow2.f32 %v952_v19  ;;  %v954_v27 = vmul.f32 1.442695, %v929_v20  ;;  %v932_v28 = vmul.f32 2.0, %v863_v21  ;;  %v865_v29 = vadd.f32 %v864_v26, %v2440_v36  ;;  %v917_v30 = vpop.f32.mrf.mxu1 }
 0x30a   : > { %2074 = vpow2.f32 %v956_v23  ;;  %v958_v31 = vmul.f32 1.442695, %v931_v24  ;;  %v934_v32 = vmul.f32 2.0, %v916_v25  ;;  %v918_v33 = vadd.f32 %v917_v30, %v2440_v36 }
 0x30b   : > { %2076 = vpow2.f32 %v954_v27  ;;  %v960_v34 = vmul.f32 1.442695, %v932_v28  ;;  %v933_v35 = vmul.f32 2.0, %v865_v29 }
 0x30c   : > { %2078 = vpow2.f32 %v958_v31  ;;  %v964_v37 = vmul.f32 1.442695, %v934_v32  ;;  %v935_v38 = vmul.f32 2.0, %v918_v33 }
 0x30d   : > { %2080 = vpow2.f32 %v960_v34  ;;  %v962_v39 = vmul.f32 1.442695, %v933_v35 }
 0x30e   : > { %v2057_v40 = vpop.eup %2056  ;;  %2082 = vpow2.f32 %v964_v37  ;;  %v966_v41 = vmul.f32 1.442695, %v935_v38 }
 0x30f   : > { %v2059_v42 = vpop.eup %2058  ;;  %v968_v43 = vadd.f32 1.0, %v2057_v40  ;;  %2084 = vpow2.f32 %v962_v39 }
 0x310   : > { %v2061_v44 = vpop.eup %2060  ;;  %2086 = vpow2.f32 %v966_v41  ;;  %v970_v7 = vadd.f32 1.0, %v2059_v42 }
 0x311   : > { %v2063_v45 = vpop.eup %2062  ;;  %v969_v46 = vadd.f32 1.0, %v2061_v44  ;;  %2088 = vrcp.f32 %v968_v43 }
 0x312   : > { %v2065_v47 = vpop.eup %2064  ;;  %v971_v36 = vadd.f32 1.0, %v2063_v45 }
 0x313   : > { %v2067_v48 = vpop.eup %2066  ;;  %2090 = vrcp.f32 %v969_v46  ;;  %v972_v49 = vadd.f32 1.0, %v2065_v47 }
 0x314   : > { %v2069_v50 = vpop.eup %2068  ;;  %2092 = vrcp.f32 %v971_v36  ;;  %v974_v51 = vadd.f32 1.0, %v2067_v48 }
 0x315   : > { %v2071_v52 = vpop.eup %2070  ;;  %2094 = vrcp.f32 %v972_v49  ;;  %v973_v53 = vadd.f32 1.0, %v2069_v50 }
 0x316   : > { %v2073_v54 = vpop.eup %2072  ;;  %2096 = vrcp.f32 %v974_v51  ;;  %v975_v55 = vadd.f32 1.0, %v2071_v52 }
 0x317   : > { %v2075_v56 = vpop.eup %2074  ;;  %2098 = vrcp.f32 %v973_v53  ;;  %v976_v57 = vadd.f32 1.0, %v2073_v54 }
 0x318   : > { %v2077_v58 = vpop.eup %2076  ;;  %2100 = vrcp.f32 %v975_v55  ;;  %v978_v59 = vadd.f32 1.0, %v2075_v56 }
 0x319   : > { %v2079_v60 = vpop.eup %2078  ;;  %2102 = vrcp.f32 %v976_v57  ;;  %v977_v61 = vadd.f32 1.0, %v2077_v58 }
 0x31a   : > { %v2081_v62 = vpop.eup %2080  ;;  %2104 = vrcp.f32 %v978_v59  ;;  %v979_v63 = vadd.f32 1.0, %v2079_v60 }
 0x31b   : > { %v2083_v1 = vpop.eup %2082  ;;  %2106 = vrcp.f32 %v977_v61  ;;  %v980_v2 = vadd.f32 1.0, %v2081_v62 }
 0x31c   : > { %v2085_v3 = vpop.eup %2084  ;;  %2108 = vrcp.f32 %v979_v63  ;;  %v982_v5 = vadd.f32 1.0, %v2083_v1 }
 0x31d   : > { %v2087_v6 = vpop.eup %2086  ;;  %2110 = vrcp.f32 %v980_v2  ;;  %v981_v8 = vadd.f32 1.0, %v2085_v3  ;;  %v1922_v2 = vld [vmem:[#allocation2 + $0x30] sm:$0xff]   ;;  %v1923_v3 = vld [vmem:[#allocation2 + $0x38] sm:$0xff]  }
 0x31e   : > { %2112 = vrcp.f32 %v982_v5  ;;  %v983_v9 = vadd.f32 1.0, %v2087_v6  ;;  %v2089_v10 = vpop.eup %2088  ;;  %v1063_v5 = vpop.permute.xlu0 %1062 }
 0x31f   : > { %2114 = vrcp.f32 %v981_v8  ;;  %v1000_v22 = vmul.f32 2.0, %v2089_v10  ;;  %v2454_v6 = vpop.permute.xlu1 %1067 }
 0x320   : > { %v2091_v11 = vpop.eup %2090  ;;  %2116 = vrcp.f32 %v983_v9 }
 0x321   : > { %v2093_v12 = vpop.eup %2092  ;;  %2118 = vrcp.f32 %v970_v7  ;;  %v1001_v34 = vmul.f32 2.0, %v2091_v11  ;;  %v1016_v61 = vsub.f32 1.0, %v1000_v22 }
 0x322   : > { %v2095_v13 = vpop.eup %2094  ;;  %v1003_v35 = vmul.f32 2.0, %v2093_v12  ;;  %v1053_v7 = vpop.permute.xlu0 %1052 }
 0x323   : > { %v2097_v14 = vpop.eup %2096  ;;  %v1004_v38 = vmul.f32 2.0, %v2095_v13  ;;  %v1017_v52 = vsub.f32 1.0, %v1001_v34 }
 0x324   : > { %v2099_v15 = vpop.eup %2098  ;;  %v1006_v39 = vmul.f32 2.0, %v2097_v14  ;;  %v1019_v55 = vsub.f32 1.0, %v1003_v35 }
 0x325   : > { %v2101_v4 = vpop.eup %2100  ;;  %v1005_v25 = vmul.f32 2.0, %v2099_v15  ;;  %v1020_v56 = vsub.f32 1.0, %v1004_v38 }
 0x326   : > { %v2103_v16 = vpop.eup %2102  ;;  %v1007_v30 = vmul.f32 2.0, %v2101_v4  ;;  %v1022_v59 = vsub.f32 1.0, %v1006_v39  ;;  %v1058_v4 = vpop.permute.xlu1 %1057 }
 0x327   : > { %v2105_v17 = vpop.eup %2104  ;;  %v1008_v27 = vmul.f32 2.0, %v2103_v16  ;;  %v1021_v45 = vsub.f32 1.0, %v1005_v25  ;;  %v1037_v63 = vpack.c.bf16 %v1020_v56, %v1016_v61 }
 0x328   : > { %v2107_v18 = vpop.eup %2106  ;;  %v1010_v32 = vmul.f32 2.0, %v2105_v17  ;;  %v1023_v48 = vsub.f32 1.0, %v1007_v30 }
 0x329   : > { %v2109_v19 = vpop.eup %2108  ;;  %v1009_v24 = vmul.f32 2.0, %v2107_v18  ;;  %v1024_v36 = vsub.f32 1.0, %v1008_v27  ;;  %v1038_v58 = vpack.c.bf16 %v1021_v45, %v1017_v52 }
 0x32a   : > { %v2111_v20 = vpop.eup %2110  ;;  %v1011_v29 = vmul.f32 2.0, %v2109_v19  ;;  %v1026_v51 = vsub.f32 1.0, %v1010_v32  ;;  %v1040_v60 = vpack.c.bf16 %v1023_v48, %v1019_v55 }
 0x32b   : > { %v2113_v21 = vpop.eup %2112  ;;  %v1012_v23 = vmul.f32 2.0, %v2111_v20  ;;  %v1025_v42 = vsub.f32 1.0, %v1009_v24 }
 0x32c   : > { %v2115_v26 = vpop.eup %2114  ;;  %v1014_v28 = vmul.f32 2.0, %v2113_v21  ;;  %v1027_v46 = vsub.f32 1.0, %v1011_v29 }
 0x32d   : > { %v2117_v31 = vpop.eup %2116  ;;  %v1013_v33 = vmul.f32 2.0, %v2115_v26  ;;  %v1028_v41 = vsub.f32 1.0, %v1012_v23 }
 0x32e   : > { %v2119_v37 = vpop.eup %2118  ;;  %v1015_v40 = vmul.f32 2.0, %v2117_v31  ;;  %v1030_v44 = vsub.f32 1.0, %v1014_v28 }
 0x32f   : > { %v1029_v43 = vsub.f32 1.0, %v1013_v33  ;;  %v1002_v49 = vmul.f32 2.0, %v2119_v37  ;;  %v1041_v54 = vpack.c.bf16 %v1028_v41, %v1024_v36 }
 0x330   : > { %v1031_v47 = vsub.f32 1.0, %v1015_v40  ;;  %v1043_v57 = vpack.c.bf16 %v1030_v44, %v1026_v51 }
 0x331   : > { %v1042_v50 = vpack.c.bf16 %v1029_v43, %v1025_v42  ;;  %v1018_v62 = vsub.f32 1.0, %v1002_v49 }
 0x332   : > { %v1044_v53 = vpack.c.bf16 %v1031_v47, %v1027_v46 }
 0x333   : > { %1098 = vmatprep.subr.bf16.mxu0 %v1042_v50  ;;  %v1039_v1 = vpack.c.bf16 %v1022_v59, %v1018_v62 }
 0x334   : > { %1151 = vmatprep.subr.bf16.mxu1 %v1044_v53  ;;  %1099 = vmatpush1.bf16.msra.mxu0 %v1041_v54 }
 0x335   : > { %1152 = vmatpush1.bf16.msra.mxu1 %v1043_v57  ;;  %1100 = vmatprep.subr.bf16.mxu0 %v1038_v58 }
 0x336   : > { %1153 = vmatprep.subr.bf16.mxu1 %v1040_v60 }
 0x338   : > { %1101 = vmatpush1.bf16.msra.mxu0 %v1037_v63 }
 0x339   : > { %1154 = vmatpush1.bf16.msra.mxu1 %v1039_v1 }
 0x33b   : > { %1861 = vmatmul.mubr.msk.bf16.vlgmr.msra.gmra.mxu0 %vm535_vm2, %v1922_v2 }
 0x33c   : > { %1863 = vmatmul.mubr.msk.bf16.vlgmr.msra.gmra.mxu1 %vm535_vm2, %v1922_v2  ;;  %1128 = vmatprep.mubr.bf16.mxu0 %v2322_v0 }
 0x33d   : > { %1181 = vmatprep.mubr.bf16.mxu1 %v2322_v0 }
 0x343   : > { %1862 = vmatmul.mubr.msk.bf16.gmra.mxu0 %vm535_vm2, %v1923_v3 }
 0x344   : > { %1864 = vmatmul.mubr.msk.bf16.gmra.mxu1 %vm535_vm2, %v1923_v3  ;;  %1390 = vmatprep.mubr.bf16.mxu0 %v2322_v0 }
 0x345   : > { %1443 = vmatprep.mubr.bf16.mxu1 %v2322_v0 }
 0x3fb   : > { %v1120_v8 = vpop.f32.mrf.mxu0 }
 0x3fc   : > { %v1121_v9 = vadd.f32 %v1120_v8, %v1053_v7  ;;  %v1173_v10 = vpop.f32.mrf.mxu1 }
 0x3fd   : > { %v1174_v11 = vadd.f32 %v1173_v10, %v1053_v7  ;;  %v1122_v12 = vpop.f32.mrf.mxu0 }
 0x3fe   : > { %v1192_v13 = vmul.f32 2.0, %v1121_v9  ;;  %v1123_v14 = vadd.f32 %v1122_v12, %v1053_v7  ;;  %v1175_v15 = vpop.f32.mrf.mxu1 }
 0x3ff   : > { %v1194_v16 = vmul.f32 2.0, %v1174_v11  ;;  %v1176_v17 = vadd.f32 %v1175_v15, %v1053_v7  ;;  %v1124_v18 = vpop.f32.mrf.mxu0 }
 0x400   : > { %v1208_v19 = vmul.f32 1.442695, %v1192_v13  ;;  %v1193_v20 = vmul.f32 2.0, %v1123_v14  ;;  %v1125_v21 = vadd.f32 %v1124_v18, %v1058_v4  ;;  %v1177_v22 = vpop.f32.mrf.mxu1 }
 0x401   : > { %v1212_v23 = vmul.f32 1.442695, %v1194_v16  ;;  %v1195_v24 = vmul.f32 2.0, %v1176_v17  ;;  %v1178_v25 = vadd.f32 %v1177_v22, %v1058_v4  ;;  %v1126_v26 = vpop.f32.mrf.mxu0 }
 0x402   : > { %2120 = vpow2.f32 %v1208_v19  ;;  %v1210_v27 = vmul.f32 1.442695, %v1193_v20  ;;  %v1196_v28 = vmul.f32 2.0, %v1125_v21  ;;  %v1127_v29 = vadd.f32 %v1126_v26, %v1058_v4  ;;  %v1179_v30 = vpop.f32.mrf.mxu1 }
 0x403   : > { %2122 = vpow2.f32 %v1212_v23  ;;  %v1214_v31 = vmul.f32 1.442695, %v1195_v24  ;;  %v1198_v32 = vmul.f32 2.0, %v1178_v25  ;;  %v1180_v33 = vadd.f32 %v1179_v30, %v1058_v4  ;;  %v1130_v34 = vpop.f32.mrf.mxu0 }
 0x404   : > { %2124 = vpow2.f32 %v1210_v27  ;;  %v1216_v35 = vmul.f32 1.442695, %v1196_v28  ;;  %v1197_v37 = vmul.f32 2.0, %v1127_v29  ;;  %v1131_v38 = vadd.f32 %v1130_v34, %v1063_v5  ;;  %v1183_v39 = vpop.f32.mrf.mxu1 }
 0x405   : > { %2126 = vpow2.f32 %v1214_v31  ;;  %v1220_v40 = vmul.f32 1.442695, %v1198_v32  ;;  %v1199_v41 = vmul.f32 2.0, %v1180_v33  ;;  %v1184_v42 = vadd.f32 %v1183_v39, %v1063_v5  ;;  %v1132_v43 = vpop.f32.mrf.mxu0 }
 0x406   : > { %2128 = vpow2.f32 %v1216_v35  ;;  %v1218_v44 = vmul.f32 1.442695, %v1197_v37  ;;  %v1200_v45 = vmul.f32 2.0, %v1131_v38  ;;  %v1133_v46 = vadd.f32 %v1132_v43, %v1063_v5  ;;  %v1185_v47 = vpop.f32.mrf.mxu1 }
 0x407   : > { %2130 = vpow2.f32 %v1220_v40  ;;  %v1222_v36 = vmul.f32 1.442695, %v1199_v41  ;;  %v1202_v48 = vmul.f32 2.0, %v1184_v42  ;;  %v1186_v49 = vadd.f32 %v1185_v47, %v1063_v5  ;;  %v1134_v50 = vpop.f32.mrf.mxu0 }
 0x408   : > { %2132 = vpow2.f32 %v1218_v44  ;;  %v1224_v51 = vmul.f32 1.442695, %v1200_v45  ;;  %v1201_v52 = vmul.f32 2.0, %v1133_v46  ;;  %v1135_v53 = vadd.f32 %v1134_v50, %v2454_v6  ;;  %v1187_v54 = vpop.f32.mrf.mxu1 }
 0x409   : > { %2134 = vpow2.f32 %v1222_v36  ;;  %v1228_v55 = vmul.f32 1.442695, %v1202_v48  ;;  %v1203_v56 = vmul.f32 2.0, %v1186_v49  ;;  %v1188_v57 = vadd.f32 %v1187_v54, %v2454_v6  ;;  %v1136_v58 = vpop.f32.mrf.mxu0 }
 0x40a   : > { %2136 = vpow2.f32 %v1224_v51  ;;  %v1226_v59 = vmul.f32 1.442695, %v1201_v52  ;;  %v1204_v60 = vmul.f32 2.0, %v1135_v53  ;;  %v1137_v61 = vadd.f32 %v1136_v58, %v2454_v6  ;;  %v1189_v62 = vpop.f32.mrf.mxu1 }
 0x40b   : > { %2138 = vpow2.f32 %v1228_v55  ;;  %v1230_v63 = vmul.f32 1.442695, %v1203_v56  ;;  %v1206_v1 = vmul.f32 2.0, %v1188_v57  ;;  %v1190_v2 = vadd.f32 %v1189_v62, %v2454_v6 }
 0x40c   : > { %2140 = vpow2.f32 %v1226_v59  ;;  %v1232_v3 = vmul.f32 1.442695, %v1204_v60  ;;  %v1205_v5 = vmul.f32 2.0, %v1137_v61 }
 0x40d   : > { %2142 = vpow2.f32 %v1230_v63  ;;  %v1236_v7 = vmul.f32 1.442695, %v1206_v1  ;;  %v1207_v8 = vmul.f32 2.0, %v1190_v2 }
 0x40e   : > { %2144 = vpow2.f32 %v1232_v3  ;;  %v1234_v9 = vmul.f32 1.442695, %v1205_v5 }
 0x40f   : > { %v2121_v10 = vpop.eup %2120  ;;  %2146 = vpow2.f32 %v1236_v7  ;;  %v1238_v11 = vmul.f32 1.442695, %v1207_v8 }
 0x410   : > { %v2123_v12 = vpop.eup %2122  ;;  %v1240_v13 = vadd.f32 1.0, %v2121_v10  ;;  %2148 = vpow2.f32 %v1234_v9 }
 0x411   : > { %v2125_v14 = vpop.eup %2124  ;;  %2150 = vpow2.f32 %v1238_v11  ;;  %v1242_v39 = vadd.f32 1.0, %v2123_v12 }
 0x412   : > { %v2127_v15 = vpop.eup %2126  ;;  %v1241_v4 = vadd.f32 1.0, %v2125_v14  ;;  %2152 = vrcp.f32 %v1240_v13 }
 0x413   : > { %v2129_v16 = vpop.eup %2128  ;;  %v1243_v6 = vadd.f32 1.0, %v2127_v15 }
 0x414   : > { %v2131_v17 = vpop.eup %2130  ;;  %2154 = vrcp.f32 %v1241_v4  ;;  %v1244_v18 = vadd.f32 1.0, %v2129_v16 }
 0x415   : > { %v2133_v19 = vpop.eup %2132  ;;  %2156 = vrcp.f32 %v1243_v6  ;;  %v1246_v20 = vadd.f32 1.0, %v2131_v17 }
 0x416   : > { %v2135_v21 = vpop.eup %2134  ;;  %2158 = vrcp.f32 %v1244_v18  ;;  %v1245_v22 = vadd.f32 1.0, %v2133_v19 }
 0x417   : > { %v2137_v23 = vpop.eup %2136  ;;  %2160 = vrcp.f32 %v1246_v20  ;;  %v1247_v24 = vadd.f32 1.0, %v2135_v21 }
 0x418   : > { %v2139_v25 = vpop.eup %2138  ;;  %2162 = vrcp.f32 %v1245_v22  ;;  %v1248_v26 = vadd.f32 1.0, %v2137_v23 }
 0x419   : > { %v2141_v27 = vpop.eup %2140  ;;  %2164 = vrcp.f32 %v1247_v24  ;;  %v1250_v28 = vadd.f32 1.0, %v2139_v25 }
 0x41a   : > { %v2143_v29 = vpop.eup %2142  ;;  %2166 = vrcp.f32 %v1248_v26  ;;  %v1249_v30 = vadd.f32 1.0, %v2141_v27 }
 0x41b   : > { %v2145_v31 = vpop.eup %2144  ;;  %2168 = vrcp.f32 %v1250_v28  ;;  %v1251_v32 = vadd.f32 1.0, %v2143_v29 }
 0x41c   : > { %v2147_v33 = vpop.eup %2146  ;;  %2170 = vrcp.f32 %v1249_v30  ;;  %v1252_v34 = vadd.f32 1.0, %v2145_v31 }
 0x41d   : > { %v2149_v35 = vpop.eup %2148  ;;  %2172 = vrcp.f32 %v1251_v32  ;;  %v1254_v37 = vadd.f32 1.0, %v2147_v33 }
 0x41e   : > { %v2151_v38 = vpop.eup %2150  ;;  %2174 = vrcp.f32 %v1252_v34  ;;  %v1253_v40 = vadd.f32 1.0, %v2149_v35  ;;  %v1924_v34 = vld [vmem:[#allocation2 + $0x40] sm:$0xff]   ;;  %v1925_v35 = vld [vmem:[#allocation2 + $0x48] sm:$0xff]  }
 0x41f   : > { %2176 = vrcp.f32 %v1254_v37  ;;  %v1255_v41 = vadd.f32 1.0, %v2151_v38  ;;  %v2153_v42 = vpop.eup %2152  ;;  %v1335_v37 = vpop.permute.xlu0 %1334 }
 0x420   : > { %2178 = vrcp.f32 %v1253_v40  ;;  %v1272_v54 = vmul.f32 2.0, %v2153_v42  ;;  %v2468_v38 = vpop.permute.xlu1 %1339 }
 0x421   : > { %v2155_v43 = vpop.eup %2154  ;;  %2180 = vrcp.f32 %v1255_v41 }
 0x422   : > { %v2157_v44 = vpop.eup %2156  ;;  %2182 = vrcp.f32 %v1242_v39  ;;  %v1273_v3 = vmul.f32 2.0, %v2155_v43  ;;  %v1288_v30 = vsub.f32 1.0, %v1272_v54 }
 0x423   : > { %v2159_v45 = vpop.eup %2158  ;;  %v1275_v5 = vmul.f32 2.0, %v2157_v44  ;;  %v1325_v39 = vpop.permute.xlu0 %1324 }
 0x424   : > { %v2161_v46 = vpop.eup %2160  ;;  %v1276_v8 = vmul.f32 2.0, %v2159_v45  ;;  %v1289_v21 = vsub.f32 1.0, %v1273_v3 }
 0x425   : > { %v2163_v47 = vpop.eup %2162  ;;  %v1278_v9 = vmul.f32 2.0, %v2161_v46  ;;  %v1291_v24 = vsub.f32 1.0, %v1275_v5 }
 0x426   : > { %v2165_v36 = vpop.eup %2164  ;;  %v1277_v57 = vmul.f32 2.0, %v2163_v47  ;;  %v1292_v25 = vsub.f32 1.0, %v1276_v8 }
 0x427   : > { %v2167_v48 = vpop.eup %2166  ;;  %v1279_v62 = vmul.f32 2.0, %v2165_v36  ;;  %v1294_v28 = vsub.f32 1.0, %v1278_v9  ;;  %v1330_v36 = vpop.permute.xlu1 %1329 }
 0x428   : > { %v2169_v49 = vpop.eup %2168  ;;  %v1280_v59 = vmul.f32 2.0, %v2167_v48  ;;  %v1293_v15 = vsub.f32 1.0, %v1277_v57  ;;  %v1309_v32 = vpack.c.bf16 %v1292_v25, %v1288_v30 }
 0x429   : > { %v2171_v50 = vpop.eup %2170  ;;  %v1282_v1 = vmul.f32 2.0, %v2169_v49  ;;  %v1295_v17 = vsub.f32 1.0, %v1279_v62 }
 0x42a   : > { %v2173_v51 = vpop.eup %2172  ;;  %v1281_v56 = vmul.f32 2.0, %v2171_v50  ;;  %v1296_v6 = vsub.f32 1.0, %v1280_v59  ;;  %v1310_v27 = vpack.c.bf16 %v1293_v15, %v1289_v21 }
 0x42b   : > { %v2175_v52 = vpop.eup %2174  ;;  %v1283_v61 = vmul.f32 2.0, %v2173_v51  ;;  %v1298_v20 = vsub.f32 1.0, %v1282_v1  ;;  %v1312_v29 = vpack.c.bf16 %v1295_v17, %v1291_v24 }
 0x42c   : > { %v2177_v53 = vpop.eup %2176  ;;  %v1284_v55 = vmul.f32 2.0, %v2175_v52  ;;  %v1297_v12 = vsub.f32 1.0, %v1281_v56 }
 0x42d   : > { %v2179_v58 = vpop.eup %2178  ;;  %v1286_v60 = vmul.f32 2.0, %v2177_v53  ;;  %v1299_v4 = vsub.f32 1.0, %v1283_v61 }
 0x42e   : > { %v2181_v63 = vpop.eup %2180  ;;  %v1285_v2 = vmul.f32 2.0, %v2179_v58  ;;  %v1300_v11 = vsub.f32 1.0, %v1284_v55 }
 0x42f   : > { %v2183_v7 = vpop.eup %2182  ;;  %v1287_v10 = vmul.f32 2.0, %v2181_v63  ;;  %v1302_v14 = vsub.f32 1.0, %v1286_v60 }
 0x430   : > { %v1301_v13 = vsub.f32 1.0, %v1285_v2  ;;  %v1274_v18 = vmul.f32 2.0, %v2183_v7  ;;  %v1313_v23 = vpack.c.bf16 %v1300_v11, %v1296_v6 }
 0x431   : > { %v1303_v16 = vsub.f32 1.0, %v1287_v10  ;;  %v1315_v26 = vpack.c.bf16 %v1302_v14, %v1298_v20 }
 0x432   : > { %v1314_v19 = vpack.c.bf16 %v1301_v13, %v1297_v12  ;;  %v1290_v31 = vsub.f32 1.0, %v1274_v18 }
 0x433   : > { %v1316_v22 = vpack.c.bf16 %v1303_v16, %v1299_v4 }
 0x434   : > { %1370 = vmatprep.subr.bf16.mxu0 %v1314_v19  ;;  %v1311_v33 = vpack.c.bf16 %v1294_v28, %v1290_v31 }
 0x435   : > { %1423 = vmatprep.subr.bf16.mxu1 %v1316_v22  ;;  %1371 = vmatpush1.bf16.msra.mxu0 %v1313_v23 }
 0x436   : > { %1424 = vmatpush1.bf16.msra.mxu1 %v1315_v26  ;;  %1372 = vmatprep.subr.bf16.mxu0 %v1310_v27 }
 0x437   : > { %1425 = vmatprep.subr.bf16.mxu1 %v1312_v29 }
 0x439   : > { %1373 = vmatpush1.bf16.msra.mxu0 %v1309_v32 }
 0x43a   : > { %1426 = vmatpush1.bf16.msra.mxu1 %v1311_v33 }
 0x43c   : > { %1867 = vmatmul.mubr.msk.bf16.vlgmr.msra.gmra.mxu0 %vm535_vm2, %v1924_v34 }
 0x43d   : > { %1869 = vmatmul.mubr.msk.bf16.vlgmr.msra.gmra.mxu1 %vm535_vm2, %v1924_v34  ;;  %1400 = vmatprep.mubr.bf16.mxu0 %v2322_v0 }
 0x43e   : > { %1453 = vmatprep.mubr.bf16.mxu1 %v2322_v0 }
 0x444   : > { %1868 = vmatmul.mubr.msk.bf16.gmra.mxu0 %vm535_vm2, %v1925_v35 }
 0x445   : > { %1870 = vmatmul.mubr.msk.bf16.gmra.mxu1 %vm535_vm2, %v1925_v35  ;;  %1659 = vmatprep.mubr.bf16.mxu0 %v2322_v0 }
 0x446   : > { %1706 = vmatprep.mubr.bf16.mxu1 %v2322_v0 }
 0x4fc   : > { %v1392_v40 = vpop.f32.mrf.mxu0 }
 0x4fd   : > { %v1393_v41 = vadd.f32 %v1392_v40, %v1325_v39  ;;  %v1445_v42 = vpop.f32.mrf.mxu1 }
 0x4fe   : > { %v1446_v43 = vadd.f32 %v1445_v42, %v1325_v39  ;;  %v1394_v44 = vpop.f32.mrf.mxu0 }
 0x4ff   : > { %v1464_v45 = vmul.f32 2.0, %v1393_v41  ;;  %v1395_v46 = vadd.f32 %v1394_v44, %v1325_v39  ;;  %v1447_v47 = vpop.f32.mrf.mxu1 }
 0x500   : > { %v1466_v48 = vmul.f32 2.0, %v1446_v43  ;;  %v1448_v49 = vadd.f32 %v1447_v47, %v1325_v39  ;;  %v1396_v50 = vpop.f32.mrf.mxu0 }
 0x501   : > { %v1480_v51 = vmul.f32 1.442695, %v1464_v45  ;;  %v1465_v52 = vmul.f32 2.0, %v1395_v46  ;;  %v1397_v53 = vadd.f32 %v1396_v50, %v1330_v36  ;;  %v1449_v54 = vpop.f32.mrf.mxu1 }
 0x502   : > { %v1484_v55 = vmul.f32 1.442695, %v1466_v48  ;;  %v1467_v56 = vmul.f32 2.0, %v1448_v49  ;;  %v1450_v57 = vadd.f32 %v1449_v54, %v1330_v36  ;;  %v1398_v58 = vpop.f32.mrf.mxu0 }
 0x503   : > { %2184 = vpow2.f32 %v1480_v51  ;;  %v1482_v59 = vmul.f32 1.442695, %v1465_v52  ;;  %v1468_v60 = vmul.f32 2.0, %v1397_v53  ;;  %v1399_v61 = vadd.f32 %v1398_v58, %v1330_v36  ;;  %v1451_v62 = vpop.f32.mrf.mxu1 }
 0x504   : > { %2186 = vpow2.f32 %v1484_v55  ;;  %v1486_v63 = vmul.f32 1.442695, %v1467_v56  ;;  %v1470_v1 = vmul.f32 2.0, %v1450_v57  ;;  %v1452_v2 = vadd.f32 %v1451_v62, %v1330_v36  ;;  %v1402_v3 = vpop.f32.mrf.mxu0 }
 0x505   : > { %2188 = vpow2.f32 %v1482_v59  ;;  %v1488_v5 = vmul.f32 1.442695, %v1468_v60  ;;  %v1469_v7 = vmul.f32 2.0, %v1399_v61  ;;  %v1403_v8 = vadd.f32 %v1402_v3, %v1335_v37  ;;  %v1455_v9 = vpop.f32.mrf.mxu1 }
 0x506   : > { %2190 = vpow2.f32 %v1486_v63  ;;  %v1492_v10 = vmul.f32 1.442695, %v1470_v1  ;;  %v1471_v11 = vmul.f32 2.0, %v1452_v2  ;;  %v1456_v12 = vadd.f32 %v1455_v9, %v1335_v37  ;;  %v1404_v13 = vpop.f32.mrf.mxu0 }
 0x507   : > { %2192 = vpow2.f32 %v1488_v5  ;;  %v1490_v14 = vmul.f32 1.442695, %v1469_v7  ;;  %v1472_v15 = vmul.f32 2.0, %v1403_v8  ;;  %v1405_v4 = vadd.f32 %v1404_v13, %v1335_v37  ;;  %v1457_v16 = vpop.f32.mrf.mxu1 }
 0x508   : > { %2194 = vpow2.f32 %v1492_v10  ;;  %v1494_v6 = vmul.f32 1.442695, %v1471_v11  ;;  %v1474_v17 = vmul.f32 2.0, %v1456_v12  ;;  %v1458_v18 = vadd.f32 %v1457_v16, %v1335_v37  ;;  %v1406_v19 = vpop.f32.mrf.mxu0 }
 0x509   : > { %2196 = vpow2.f32 %v1490_v14  ;;  %v1496_v20 = vmul.f32 1.442695, %v1472_v15  ;;  %v1473_v21 = vmul.f32 2.0, %v1405_v4  ;;  %v1407_v22 = vadd.f32 %v1406_v19, %v2468_v38  ;;  %v1459_v23 = vpop.f32.mrf.mxu1 }
 0x50a   : > { %2198 = vpow2.f32 %v1494_v6  ;;  %v1500_v24 = vmul.f32 1.442695, %v1474_v17  ;;  %v1475_v25 = vmul.f32 2.0, %v1458_v18  ;;  %v1460_v26 = vadd.f32 %v1459_v23, %v2468_v38  ;;  %v1408_v27 = vpop.f32.mrf.mxu0 }
 0x50b   : > { %2200 = vpow2.f32 %v1496_v20  ;;  %v1498_v28 = vmul.f32 1.442695, %v1473_v21  ;;  %v1476_v29 = vmul.f32 2.0, %v1407_v22  ;;  %v1409_v30 = vadd.f32 %v1408_v27, %v2468_v38  ;;  %v1461_v31 = vpop.f32.mrf.mxu1 }
 0x50c   : > { %2202 = vpow2.f32 %v1500_v24  ;;  %v1502_v32 = vmul.f32 1.442695, %v1475_v25  ;;  %v1478_v33 = vmul.f32 2.0, %v1460_v26  ;;  %v1462_v34 = vadd.f32 %v1461_v31, %v2468_v38 }
 0x50d   : > { %2204 = vpow2.f32 %v1498_v28  ;;  %v1504_v35 = vmul.f32 1.442695, %v1476_v29  ;;  %v1477_v37 = vmul.f32 2.0, %v1409_v30 }
 0x50e   : > { %2206 = vpow2.f32 %v1502_v32  ;;  %v1508_v39 = vmul.f32 1.442695, %v1478_v33  ;;  %v1479_v40 = vmul.f32 2.0, %v1462_v34 }
 0x50f   : > { %2208 = vpow2.f32 %v1504_v35  ;;  %v1506_v41 = vmul.f32 1.442695, %v1477_v37 }
 0x510   : > { %v2185_v42 = vpop.eup %2184  ;;  %2210 = vpow2.f32 %v1508_v39  ;;  %v1510_v43 = vmul.f32 1.442695, %v1479_v40 }
 0x511   : > { %v2187_v44 = vpop.eup %2186  ;;  %v1512_v45 = vadd.f32 1.0, %v2185_v42  ;;  %2212 = vpow2.f32 %v1506_v41 }
 0x512   : > { %v2189_v46 = vpop.eup %2188  ;;  %2214 = vpow2.f32 %v1510_v43  ;;  %v1514_v9 = vadd.f32 1.0, %v2187_v44 }
 0x513   : > { %v2191_v47 = vpop.eup %2190  ;;  %v1513_v36 = vadd.f32 1.0, %v2189_v46  ;;  %2216 = vrcp.f32 %v1512_v45 }
 0x514   : > { %v2193_v48 = vpop.eup %2192  ;;  %v1515_v38 = vadd.f32 1.0, %v2191_v47 }
 0x515   : > { %v2195_v49 = vpop.eup %2194  ;;  %2218 = vrcp.f32 %v1513_v36  ;;  %v1516_v50 = vadd.f32 1.0, %v2193_v48 }
 0x516   : > { %v2197_v51 = vpop.eup %2196  ;;  %2220 = vrcp.f32 %v1515_v38  ;;  %v1518_v52 = vadd.f32 1.0, %v2195_v49 }
 0x517   : > { %v2199_v53 = vpop.eup %2198  ;;  %2222 = vrcp.f32 %v1516_v50  ;;  %v1517_v54 = vadd.f32 1.0, %v2197_v51 }
 0x518   : > { %v2201_v55 = vpop.eup %2200  ;;  %2224 = vrcp.f32 %v1518_v52  ;;  %v1519_v56 = vadd.f32 1.0, %v2199_v53 }
 0x519   : > { %v2203_v57 = vpop.eup %2202  ;;  %2226 = vrcp.f32 %v1517_v54  ;;  %v1520_v58 = vadd.f32 1.0, %v2201_v55 }
 0x51a   : > { %v2205_v59 = vpop.eup %2204  ;;  %2228 = vrcp.f32 %v1519_v56  ;;  %v1522_v60 = vadd.f32 1.0, %v2203_v57 }
 0x51b   : > { %v2207_v61 = vpop.eup %2206  ;;  %2230 = vrcp.f32 %v1520_v58  ;;  %v1521_v62 = vadd.f32 1.0, %v2205_v59 }
 0x51c   : > { %v2209_v63 = vpop.eup %2208  ;;  %2232 = vrcp.f32 %v1522_v60  ;;  %v1523_v1 = vadd.f32 1.0, %v2207_v61 }
 0x51d   : > { %v2211_v2 = vpop.eup %2210  ;;  %2234 = vrcp.f32 %v1521_v62  ;;  %v1524_v3 = vadd.f32 1.0, %v2209_v63 }
 0x51e   : > { %v2213_v5 = vpop.eup %2212  ;;  %2236 = vrcp.f32 %v1523_v1  ;;  %v1526_v7 = vadd.f32 1.0, %v2211_v2 }
 0x51f   : > { %v2215_v8 = vpop.eup %2214  ;;  %2238 = vrcp.f32 %v1524_v3  ;;  %v1525_v10 = vadd.f32 1.0, %v2213_v5  ;;  %v1926_v3 = vld [vmem:[#allocation2 + $0x50] sm:$0xff]   ;;  %v1927_v5 = vld [vmem:[#allocation2 + $0x58] sm:$0xff]  }
 0x520   : > { %2240 = vrcp.f32 %v1526_v7  ;;  %v1527_v11 = vadd.f32 1.0, %v2215_v8  ;;  %v2217_v12 = vpop.eup %2216  ;;  %v2323_v7 = vmov 1966171168  }
 0x521   : > { %2242 = vrcp.f32 %v1525_v10  ;;  %v1544_v23 = vmul.f32 2.0, %v2217_v12  ;;  %v1728_v8 = vunpack.c.l.s4 %v2323_v7 }
 0x522   : > { %v2219_v13 = vpop.eup %2218  ;;  %2244 = vrcp.f32 %v1527_v11 }
 0x523   : > { %v2221_v14 = vpop.eup %2220  ;;  %2246 = vrcp.f32 %v1514_v9  ;;  %v1545_v35 = vmul.f32 2.0, %v2219_v13  ;;  %v1560_v62 = vsub.f32 1.0, %v1544_v23  ;;  %v1730_v9 = vlaneseq }
 0x524   : > { %v2223_v15 = vpop.eup %2222  ;;  %v1547_v37 = vmul.f32 2.0, %v2221_v14  ;;  %v1729_v10 = vunpack.c.0.s8 %v1728_v8  ;;  %v1597_v14 = vpop.permute.xlu0 %1596 }
 0x525   : > { %v2225_v4 = vpop.eup %2224  ;;  %v1548_v40 = vmul.f32 2.0, %v2223_v15  ;;  %v1561_v53 = vsub.f32 1.0, %v1545_v35  ;;  %v1731_v11 = vshrl.u32 %v1730_v9, 7  ;;  %vm1752_vm3 = vcmp.lt.s32.totalorder %v1730_v9, 512 }
 0x526   : > { %v2227_v16 = vpop.eup %2226  ;;  %v1550_v41 = vmul.f32 2.0, %v2225_v4  ;;  %v1563_v56 = vsub.f32 1.0, %v1547_v37 }
 0x527   : > { %v2229_v6 = vpop.eup %2228  ;;  %v1549_v26 = vmul.f32 2.0, %v2227_v16  ;;  %v1564_v57 = vsub.f32 1.0, %v1548_v40 }
 0x528   : > { %v2231_v17 = vpop.eup %2230  ;;  %v1551_v31 = vmul.f32 2.0, %v2229_v6  ;;  %v1566_v60 = vsub.f32 1.0, %v1550_v41  ;;  %v1732_v6 = vsub.s32 %v1729_v10, %v1731_v11 }
 0x529   : > { %v2233_v18 = vpop.eup %2232  ;;  %v1552_v28 = vmul.f32 2.0, %v2231_v17  ;;  %v1565_v47 = vsub.f32 1.0, %v1549_v26  ;;  %v1581_v1 = vpack.c.bf16 %v1564_v57, %v1560_v62 }
 0x52a   : > { %v2235_v19 = vpop.eup %2234  ;;  %v1554_v33 = vmul.f32 2.0, %v2233_v18  ;;  %v1567_v49 = vsub.f32 1.0, %v1551_v31 }
 0x52b   : > { %v2237_v20 = vpop.eup %2236  ;;  %v1553_v25 = vmul.f32 2.0, %v2235_v19  ;;  %v1568_v38 = vsub.f32 1.0, %v1552_v28  ;;  %v1582_v59 = vpack.c.bf16 %v1565_v47, %v1561_v53 }
 0x52c   : > { %v2239_v21 = vpop.eup %2238  ;;  %v1555_v30 = vmul.f32 2.0, %v2237_v20  ;;  %v1570_v52 = vsub.f32 1.0, %v1554_v33  ;;  %v1584_v61 = vpack.c.bf16 %v1567_v49, %v1563_v56 }
 0x52d   : > { %v2241_v22 = vpop.eup %2240  ;;  %v1556_v24 = vmul.f32 2.0, %v2239_v21  ;;  %v1569_v44 = vsub.f32 1.0, %v1553_v25 }
 0x52e   : > { %v2243_v27 = vpop.eup %2242  ;;  %v1558_v29 = vmul.f32 2.0, %v2241_v22  ;;  %v1571_v36 = vsub.f32 1.0, %v1555_v30 }
 0x52f   : > { %v2245_v32 = vpop.eup %2244  ;;  %v1557_v34 = vmul.f32 2.0, %v2243_v27  ;;  %v1572_v43 = vsub.f32 1.0, %v1556_v24 }
 0x530   : > { %v2247_v39 = vpop.eup %2246  ;;  %v1559_v42 = vmul.f32 2.0, %v2245_v32  ;;  %v1574_v46 = vsub.f32 1.0, %v1558_v29 }
 0x531   : > { %v1573_v45 = vsub.f32 1.0, %v1557_v34  ;;  %v1546_v50 = vmul.f32 2.0, %v2247_v39  ;;  %v1585_v55 = vpack.c.bf16 %v1572_v43, %v1568_v38 }
 0x532   : > { %v1575_v48 = vsub.f32 1.0, %v1559_v42  ;;  %v1587_v58 = vpack.c.bf16 %v1574_v46, %v1570_v52 }
 0x533   : > { %v1586_v51 = vpack.c.bf16 %v1573_v45, %v1569_v44  ;;  %v1562_v63 = vsub.f32 1.0, %v1546_v50 }
 0x534   : > { %v1588_v54 = vpack.c.bf16 %v1575_v48, %v1571_v36 }
 0x535   : > { %1639 = vmatprep.subr.bf16.mxu0 %v1586_v51  ;;  %v1583_v2 = vpack.c.bf16 %v1566_v60, %v1562_v63 }
 0x536   : > { %1686 = vmatprep.subr.bf16.mxu1 %v1588_v54  ;;  %1640 = vmatpush1.bf16.msra.mxu0 %v1585_v55 }
 0x537   : > { %1687 = vmatpush1.bf16.msra.mxu1 %v1587_v58  ;;  %1641 = vmatprep.subr.bf16.mxu0 %v1582_v59 }
 0x538   : > { %1688 = vmatprep.subr.bf16.mxu1 %v1584_v61 }
 0x53a   : > { %1642 = vmatpush1.bf16.msra.mxu0 %v1581_v1 }
 0x53b   : > { %1689 = vmatpush1.bf16.msra.mxu1 %v1583_v2 }
 0x53d   : > { %1873 = vmatmul.mubr.msk.bf16.vlgmr.msra.gmra.mxu0 %vm535_vm2, %v1926_v3 }
 0x53e   : > { %1875 = vmatmul.mubr.msk.bf16.vlgmr.msra.gmra.mxu1 %vm535_vm2, %v1926_v3  ;;  %1667 = vmatprep.mubr.bf16.mxu0 %v2322_v0 }
 0x53f   : > { %1714 = vmatprep.mubr.bf16.mxu1 %v2322_v0 }
 0x545   : > { %1874 = vmatmul.mubr.msk.bf16.gmra.mxu0 %vm535_vm2, %v1927_v5 }
 0x546   : > { %1876 = vmatmul.mubr.msk.bf16.gmra.mxu1 %vm535_vm2, %v1927_v5 }
 0x5fd   : > { %v1661_v12 = vpop.f32.mrf.mxu0 }
 0x5fe   : > { %v1708_v13 = vpop.f32.mrf.mxu1  ;;  %v1662_v4 = vadd.f32 %v1661_v12, %v1597_v14 }
 0x5ff   : > { %v1663_v15 = vpop.f32.mrf.mxu0  ;;  %v1709_v0 = vadd.f32 %v1708_v13, %v1597_v14 }
 0x600   : > { %v1664_v16 = vadd.f32 %v1663_v15, %v1597_v14  ;;  %v1710_v17 = vpop.f32.mrf.mxu1 }
 0x601   : > { %v1711_v18 = vadd.f32 %v1710_v17, %v1597_v14  ;;  %v1665_v19 = vpop.f32.mrf.mxu0 }
 0x602   : > { %v1725_v20 = vcombine.low %v1662_v4, %v1664_v16  ;;  %v1712_v21 = vpop.f32.mrf.mxu1 }
 0x603   : > { %v1726_v22 = vcombine.low %v1709_v0, %v1711_v18  ;;  %v1666_v23 = vpop.f32.mrf.mxu0 }
 0x604   : > { %v1733_v24 = vrot.slane %v1725_v20, %v1732_v6  ;;  %v1713_v25 = vpop.f32.mrf.mxu1 }
 0x605   : > { %v1740_v26 = vrot.slane %v1726_v22, %v1732_v6  ;;  %v1669_v27 = vpop.f32.mrf.mxu0 }
 0x606   : > { %v1716_v28 = vpop.f32.mrf.mxu1 }
 0x607   : > { %v1741_v29 = vcombine.low %v1733_v24, %v1740_v26  ;;  %v1670_v30 = vpop.f32.mrf.mxu0 }
 0x608   : > { %v1717_v31 = vpop.f32.mrf.mxu1 }
 0x609   : > { %v1748_v32 = vrot.slane %v1741_v29, %v1732_v6  ;;  %v1671_v33 = vpop.f32.mrf.mxu0 }
 0x60a   : > { %v1718_v34 = vpop.f32.mrf.mxu1 }
 0x60b   : > { %1754 = vst.msk [vmem:[%s200_s11] sm:$0xf] %vm1752_vm3, %v1748_v32  ;;  %v1672_v35 = vpop.f32.mrf.mxu0 }
 0x60c   : > { %v1719_v37 = vpop.f32.mrf.mxu1 }
 0x60d PF: > { %s15_s12 = sadd.s32 1, %s2314_s12  }
 0x60e   : > { %p12_p2 = scmp.ge.s32.totalorder %s15_s12, 4  }
 0x610   :  { %14 = sbr.rel (!%p12_p2) target bundleno = 2 (0x2), region = 81 }
 0x615   :  { %1775 = vsyncpa [#allocation3], 1 }
 0x616   :  { %1777 = vsyncpa [#allocation3 + $0x1], 1 }
 0x617   :  { %1778 = vsyncpa [#allocation5], 1 }

</bundles_post_ra>
